<compile_context>
chip_gen: v6e
topology: v6e:2x2x1
jax: 0.10.0
libtpu: 0.0.40
codegen_flags: <defaults>
</compile_context>

<pallas_src>
import functools

import jax
import jax.numpy as jnp
from jax.experimental import pallas as pl
from jax.experimental.pallas import tpu as pltpu

# ----------------------------- configuration --------------------------------
N_BATCH = 2          # batch
C_IN = 3             # RGB input channels
H = W = 16           # spatial
KH = KW = 3          # stem kernel size (stride 1, pad 1 -> "same")
F_FEAT = 64          # num_backbone_features (small stand-in for 1280)
NUM_CLASSES = {"level": 5, "sub_category": 7, "main_category": 3}
BN_EPS = 1e-5

# padded / packed sizes
HW = H * W                                   # 256
N_PAD = 8                                    # sublane-pad the batch (2 -> 8)
P_RAW = KH * KW * C_IN                       # 27
P_PAD = 32                                   # padded contraction dim
BIAS_COL = P_RAW                             # constant-1 column carrying the conv bias
F2 = F_FEAT // 2                             # 32  (level hidden)
F4 = F_FEAT // 4                             # 16  (sub_category hidden)
NM = NUM_CLASSES["main_category"]            # 3
H1_RAW = F2 + F4 + NM                        # 51 packed first-stage width
H1_PAD = 64
OUT_PAD = 128                                # lane-dense packed logits buffer
OFF_LEVEL = 0
OFF_SUB = 8
OFF_MAIN = 16
INV_HW = 1.0 / float(HW)


# ------------------------------ Pallas kernel --------------------------------
def _fused_kernel(patches_ref, conv_w_ref, w1_ref, w2_ref, vecs_ref, out_ref):
    """Backbone stem + GAP + all heads, fused.  5 inputs, 1 lane-dense output.

    patches_ref: (N_PAD*HW, P_PAD)  flattened im2col patches; col BIAS_COL == 1.0
    conv_w_ref:  (P_PAD, F_FEAT)    conv weight; row BIAS_COL == conv bias (folded)
    w1_ref:      (F_FEAT, H1_PAD)   packed [lvl_w1*bn_scale | sub_w1 | main_w | 0]
    w2_ref:      (H1_PAD, OUT_PAD)  block-diag [lvl_w2 ; sub_w2 ; eye(3)] packed
    vecs_ref:    (8, OUT_PAD)       row0 = b1' (BN folded), row1 = ReLU mask, row2 = b2
    out_ref:     (N_PAD, OUT_PAD)   packed logits (single unmasked lane-dense store)
    """
    # conv stem: one MXU matmul (bias folded into the contraction) + ReLU
    y = jnp.maximum(
        jnp.dot(patches_ref[...], conv_w_ref[...],
                preferred_element_type=jnp.float32), 0.0)            # (N_PAD*HW, F)

    # global average pool in-kernel (no pool-matrix operand / extra MXU pass)
    feats = jnp.mean(y.reshape(N_PAD, HW, F_FEAT), axis=1)           # (N_PAD, F)

    vecs = vecs_ref[...]
    b1 = vecs[0:1, 0:H1_PAD]                                         # (1, 64)
    relu_mask = vecs[1:2, 0:H1_PAD]                                  # (1, 64)
    b2 = vecs[2:3, :]                                                # (1, 128)

    # packed first-stage head Linears (BatchNorm folded into w1/b1 at pack time)
    h = jnp.dot(feats, w1_ref[...], preferred_element_type=jnp.float32) + b1
    h = jnp.where(relu_mask > 0.5, jnp.maximum(h, 0.0), h)           # ReLU except main

    # second-stage Linears (block-diagonal) + identity passthrough of main logits
    out_ref[...] = jnp.dot(h, w2_ref[...],
                           preferred_element_type=jnp.float32) + b2


# ------------------------------ JAX glue -------------------------------------
def _im2col(x_nhwc):
    """3x3, stride-1, pad-1 patches. x: (N,H,W,C) -> (N, H*W, KH*KW*C)."""
    n, h, w, c = x_nhwc.shape
    xp = jnp.pad(x_nhwc, ((0, 0), (1, 1), (1, 1), (0, 0)))
    cols = []
    for i in range(KH):
        for j in range(KW):
            cols.append(xp[:, i:i + h, j:j + w, :])
    patches = jnp.concatenate(cols, axis=-1)        # (N, H, W, KH*KW*C)
    return patches.reshape(n, h * w, KH * KW * c)


def _pack_operands(params):
    """Pack/pad all weights into the fused-kernel layouts (wrapper-side XLA work)."""
    nl, ns = NUM_CLASSES["level"], NUM_CLASSES["sub_category"]

    # stem conv weight: pad contraction 27 -> 32; fold the conv bias into row BIAS_COL
    conv_w = jnp.zeros((P_PAD, F_FEAT), jnp.float32)
    conv_w = conv_w.at[:P_RAW].set(params["conv_w"])
    conv_w = conv_w.at[BIAS_COL].set(params["conv_b"][0])

    # fold BatchNorm1d (eval) into the level head's first Linear (exact algebra)
    bn_scale = params["bn_gamma"] / jnp.sqrt(params["bn_var"] + BN_EPS)   # (1, F2)
    bn_shift = params["bn_beta"] - params["bn_mean"] * bn_scale
    lvl_w1 = params["lvl_w1"] * bn_scale
    lvl_b1 = params["lvl_b1"] * bn_scale + bn_shift

    # packed first-stage weights / biases: [level(32) | sub(16) | main(3) | pad]
    w1 = jnp.zeros((F_FEAT, H1_PAD), jnp.float32)
    w1 = w1.at[:, 0:F2].set(lvl_w1)
    w1 = w1.at[:, F2:F2 + F4].set(params["sub_w1"])
    w1 = w1.at[:, F2 + F4:H1_RAW].set(params["main_w"])
    b1 = jnp.zeros((1, H1_PAD), jnp.float32)
    b1 = b1.at[:, 0:F2].set(lvl_b1)
    b1 = b1.at[:, F2:F2 + F4].set(params["sub_b1"])
    b1 = b1.at[:, F2 + F4:H1_RAW].set(params["main_b"])

    # ReLU on level+sub slices; NOT on the main-logit passthrough (or padding)
    mask = jnp.zeros((1, H1_PAD), jnp.float32).at[:, 0:F2 + F4].set(1.0)

    # block-diagonal second-stage weights + identity passthrough for main logits
    w2 = jnp.zeros((H1_PAD, OUT_PAD), jnp.float32)
    w2 = w2.at[0:F2, OFF_LEVEL:OFF_LEVEL + nl].set(params["lvl_w2"])
    w2 = w2.at[F2:F2 + F4, OFF_SUB:OFF_SUB + ns].set(params["sub_w2"])
    w2 = w2.at[F2 + F4:H1_RAW, OFF_MAIN:OFF_MAIN + NM].set(
        jnp.eye(NM, dtype=jnp.float32))
    b2 = jnp.zeros((1, OUT_PAD), jnp.float32)
    b2 = b2.at[:, OFF_LEVEL:OFF_LEVEL + nl].set(params["lvl_b2"])
    b2 = b2.at[:, OFF_SUB:OFF_SUB + ns].set(params["sub_b2"])

    # coalesce the small vectors into a single (8, 128) slab -> one DMA
    vecs = jnp.zeros((8, OUT_PAD), jnp.float32)
    vecs = vecs.at[0, 0:H1_PAD].set(b1[0])
    vecs = vecs.at[1, 0:H1_PAD].set(mask[0])
    vecs = vecs.at[2, :].set(b2[0])

    return conv_w, w1, w2, vecs


@jax.jit
def multitask_forward(x_nchw, params):
    """Forward pass of MultiTaskModel. Returns dict of per-task logits."""
    n = x_nchw.shape[0]
    # NCHW -> NHWC (kernel layout), f32 throughout for the 1e-4 check.
    x = jnp.transpose(x_nchw, (0, 2, 3, 1)).astype(jnp.float32)
    patches = _im2col(x)                                       # (n, HW, 27)
    # pad batch -> 8 (sublane granularity) and contraction -> 32, flatten to 2-D slab
    patches = jnp.pad(patches, ((0, N_PAD - n), (0, 0), (0, P_PAD - P_RAW)))
    patches = patches.reshape(N_PAD * HW, P_PAD)               # (2048, 32)
    patches = patches.at[:, BIAS_COL].set(1.0)                 # conv-bias column

    conv_w, w1, w2, vecs = _pack_operands(params)

    vmem = functools.partial(pl.BlockSpec, memory_space=pltpu.MemorySpace.VMEM)
    packed = pl.pallas_call(
        _fused_kernel,
        out_shape=jax.ShapeDtypeStruct((N_PAD, OUT_PAD), jnp.float32),
        in_specs=[vmem()] * 5,
        out_specs=vmem(),
    )(patches, conv_w, w1, w2, vecs)

    return {
        "level": packed[:n, OFF_LEVEL:OFF_LEVEL + NUM_CLASSES["level"]],
        "sub_category": packed[:n, OFF_SUB:OFF_SUB + NUM_CLASSES["sub_category"]],
        "main_category": packed[:n, OFF_MAIN:OFF_MAIN + NUM_CLASSES["main_category"]],
    }


# --------------------------- parameter construction --------------------------
def make_params(key):
    ks = jax.random.split(key, 16)
    P = KH * KW * C_IN

    def lin(k, fan_in, fan_out):
        return jax.random.normal(k, (fan_in, fan_out), jnp.float32) * (1.0 / jnp.sqrt(fan_in))

    return {
        # backbone stem (conv as matmul over im2col patches)
        "conv_w": lin(ks[0], P, F_FEAT),
        "conv_b": jax.random.normal(ks[1], (1, F_FEAT), jnp.float32) * 0.01,
        # "level" head
        "lvl_w1": lin(ks[2], F_FEAT, F2),
        "lvl_b1": jax.random.normal(ks[3], (1, F2), jnp.float32) * 0.01,
        "bn_gamma": jnp.ones((1, F2), jnp.float32),
        "bn_beta": jnp.zeros((1, F2), jnp.float32),
        "bn_mean": jax.random.normal(ks[4], (1, F2), jnp.float32) * 0.05,
        "bn_var": jnp.abs(jax.random.normal(ks[5], (1, F2), jnp.float32)) + 0.5,
        "lvl_w2": lin(ks[6], F2, NUM_CLASSES["level"]),
        "lvl_b2": jax.random.normal(ks[7], (1, NUM_CLASSES["level"]), jnp.float32) * 0.01,
        # "sub_category" head
        "sub_w1": lin(ks[8], F_FEAT, F4),
        "sub_b1": jax.random.normal(ks[9], (1, F4), jnp.float32) * 0.01,
        "sub_w2": lin(ks[10], F4, NUM_CLASSES["sub_category"]),
        "sub_b2": jax.random.normal(ks[11], (1, NUM_CLASSES["sub_category"]), jnp.float32) * 0.01,
        # default head ("main_category")
        "main_w": lin(ks[12], F_FEAT, NUM_CLASSES["main_category"]),
        "main_b": jax.random.normal(ks[13], (1, NUM_CLASSES["main_category"]), jnp.float32) * 0.01,
    }


# ----------------------------- pure-JAX reference ----------------------------
def reference_forward(x_nchw, params):
    x = jnp.transpose(x_nchw, (0, 2, 3, 1)).astype(jnp.float32)
    patches = _im2col(x)
    y = jnp.maximum(jnp.einsum("nhp,pf->nhf", patches, params["conv_w"])
                    + params["conv_b"][None], 0.0)
    f = jnp.mean(y, axis=1)
    scale = params["bn_gamma"] / jnp.sqrt(params["bn_var"] + BN_EPS)
    shift = params["bn_beta"] - params["bn_mean"] * scale
    h1 = jnp.maximum((f @ params["lvl_w1"] + params["lvl_b1"]) * scale + shift, 0.0)
    level = h1 @ params["lvl_w2"] + params["lvl_b2"]
    h2 = jnp.maximum(f @ params["sub_w1"] + params["sub_b1"], 0.0)
    sub = h2 @ params["sub_w2"] + params["sub_b2"]
    main = f @ params["main_w"] + params["main_b"]
    return {"level": level, "sub_category": sub, "main_category": main}


if __name__ == "__main__":
    key = jax.random.PRNGKey(0)
    kx, kp = jax.random.split(key)
    x = jax.random.normal(kx, (N_BATCH, C_IN, H, W), jnp.float32)   # NCHW like PyTorch
    params = make_params(kp)

    out = multitask_forward(x, params)
    jax.block_until_ready(out)

    ref = reference_forward(x, params)
    for name in out:
        assert out[name].shape == ref[name].shape, name
        assert jnp.allclose(out[name], ref[name], atol=1e-4, rtol=1e-4), name

    print("KERNEL_OK")
</pallas_src>

<mosaic_0001>
module attributes {stable_mosaic.version = 11 : i64} {
  func.func @_fused_kernel(%arg0: memref<2048x32xf32, #tpu.memory_space<vmem>>, %arg1: memref<32x64xf32, #tpu.memory_space<vmem>>, %arg2: memref<64x64xf32, #tpu.memory_space<vmem>>, %arg3: memref<64x128xf32, #tpu.memory_space<vmem>>, %arg4: memref<8x128xf32, #tpu.memory_space<vmem>>, %arg5: memref<8x128xf32, #tpu.memory_space<vmem>>) attributes {dimension_semantics = [], scalar_prefetch = 0 : i64, scratch_operands = 0 : i64, tpu.core_type = #tpu.core_type<tc>} {
    %c0 = arith.constant 0 : index
    %c0_0 = arith.constant 0 : index
    %0 = vector.load %arg0[%c0, %c0_0] : memref<2048x32xf32, #tpu.memory_space<vmem>>, vector<2048x32xf32>
    %c0_1 = arith.constant 0 : index
    %c0_2 = arith.constant 0 : index
    %1 = vector.load %arg1[%c0_1, %c0_2] : memref<32x64xf32, #tpu.memory_space<vmem>>, vector<32x64xf32>
    %cst = arith.constant dense<0.000000e+00> : vector<2048x64xf32>
    %2 = tpu.matmul %0, %1, %cst {dimension_numbers = #tpu.dot_dimension_numbers<[1], [0], [0], [1], [0, 0, 1, 1], [], []>} : vector<2048x32xf32>, vector<32x64xf32>, vector<2048x64xf32> -> vector<2048x64xf32>
    %cst_3 = arith.constant 0.000000e+00 : f32
    %3 = vector.broadcast %cst_3 : f32 to vector<2048x64xf32>
    %4 = arith.maximumf %2, %3 : vector<2048x64xf32>
    %5 = vector.shape_cast %4 : vector<2048x64xf32> to vector<8x256x64xf32>
    %cst_4 = arith.constant dense<0.000000e+00> : vector<8x64xf32>
    %6 = vector.multi_reduction <add>, %5, %cst_4 [1] : vector<8x256x64xf32> to vector<8x64xf32>
    %cst_5 = arith.constant 2.560000e+02 : f32
    %7 = vector.broadcast %cst_5 : f32 to vector<8x64xf32>
    %8 = arith.divf %6, %7 : vector<8x64xf32>
    %c0_6 = arith.constant 0 : index
    %c0_7 = arith.constant 0 : index
    %9 = vector.load %arg4[%c0_6, %c0_7] : memref<8x128xf32, #tpu.memory_space<vmem>>, vector<8x128xf32>
    %10 = vector.extract_strided_slice %9 {offsets = [0, 0], sizes = [1, 64], strides = [1, 1]} : vector<8x128xf32> to vector<1x64xf32>
    %11 = vector.extract_strided_slice %9 {offsets = [1, 0], sizes = [1, 64], strides = [1, 1]} : vector<8x128xf32> to vector<1x64xf32>
    %12 = vector.extract_strided_slice %9 {offsets = [2, 0], sizes = [1, 128], strides = [1, 1]} : vector<8x128xf32> to vector<1x128xf32>
    %c0_8 = arith.constant 0 : index
    %c0_9 = arith.constant 0 : index
    %13 = vector.load %arg2[%c0_8, %c0_9] : memref<64x64xf32, #tpu.memory_space<vmem>>, vector<64x64xf32>
    %cst_10 = arith.constant dense<0.000000e+00> : vector<8x64xf32>
    %14 = tpu.matmul %8, %13, %cst_10 {dimension_numbers = #tpu.dot_dimension_numbers<[1], [0], [0], [1], [0, 0, 1, 1], [], []>} : vector<8x64xf32>, vector<64x64xf32>, vector<8x64xf32> -> vector<8x64xf32>
    %15 = vector.broadcast %10 : vector<1x64xf32> to vector<8x64xf32>
    %16 = arith.addf %14, %15 : vector<8x64xf32>
    %cst_11 = arith.constant 5.000000e-01 : f32
    %17 = vector.broadcast %cst_11 : f32 to vector<1x64xf32>
    %18 = arith.cmpf ogt, %11, %17 : vector<1x64xf32>
    %cst_12 = arith.constant 0.000000e+00 : f32
    %19 = vector.broadcast %cst_12 : f32 to vector<8x64xf32>
    %20 = arith.maximumf %16, %19 : vector<8x64xf32>
    %21 = vector.shape_cast %18 : vector<1x64xi1> to vector<1x64xi1>
    %22 = vector.broadcast %21 : vector<1x64xi1> to vector<8x64xi1>
    %23 = arith.select %22, %20, %16 : vector<8x64xi1>, vector<8x64xf32>
    %c0_13 = arith.constant 0 : index
    %c0_14 = arith.constant 0 : index
    %24 = vector.load %arg3[%c0_13, %c0_14] : memref<64x128xf32, #tpu.memory_space<vmem>>, vector<64x128xf32>
    %cst_15 = arith.constant dense<0.000000e+00> : vector<8x128xf32>
    %25 = tpu.matmul %23, %24, %cst_15 {dimension_numbers = #tpu.dot_dimension_numbers<[1], [0], [0], [1], [0, 0, 1, 1], [], []>} : vector<8x64xf32>, vector<64x128xf32>, vector<8x128xf32> -> vector<8x128xf32>
    %26 = vector.broadcast %12 : vector<1x128xf32> to vector<8x128xf32>
    %27 = arith.addf %25, %26 : vector<8x128xf32>
    %c0_16 = arith.constant 0 : index
    %c0_17 = arith.constant 0 : index
    %28 = vector.load %arg5[%c0_16, %c0_17] : memref<8x128xf32, #tpu.memory_space<vmem>>, vector<8x128xf32>
    tpu.vector_store %arg5[%c0_16, %c0_17], %27 {strides = array<i32>} : memref<8x128xf32, #tpu.memory_space<vmem>>, vector<8x128xf32>,
    return
  }
}

</mosaic_0001>

<bundles_post_ra>
// kernel: multitask_forward.1
= control target key start
LH: loop header
LB: loop body
LE: loop exit
PB: predicated region body
PF: predicated region fallthrough
CT: control target
= control target key end

     0   :  { %vm280_vm0 = vcmask 261120   ;;  %vm2650_vm1 = vcmask 523264   ;;  %vm3233_vm2 = vcmask 1041409   ;;  %vm4396_vm3 = vmmov 0   ;;  %s5896_s1 = inlined_call_operand.vmem [shape: f32[32,64], index: 1, kind: input, shape index: {}]   ;;  %s5897_s0 = inlined_call_operand.vmem [shape: f32[2048,32], index: 0, kind: input, shape index: {}]   ;;  %s5898_s2 = inlined_call_operand.vmem [shape: f32[64,64], index: 2, kind: input, shape index: {}]   ;;  %s5899_s3 = inlined_call_operand.vmem [shape: f32[64,128], index: 3, kind: input, shape index: {}]   ;;  %s5900_s4 = inlined_call_operand.vmem [shape: f32[8,128], index: 4, kind: input, shape index: {}]   ;;  %s5901_s5 = inlined_call_operand.vmem [shape: f32[8,128], index: 5, kind: output, shape index: {}]  }
   0x1   :  { %v279_v0 = vld [vmem:[%s5896_s1 + $0x18] sm:$0xff]  ;;  %v278_v1 = vld [vmem:[%s5896_s1 + $0x10] sm:$0xff]  ;;  %v20_v2 = vld [vmem:[%s5897_s0] sm:$0xff]  ;;  %vm3235_vm4 = vcmask 1042434   ;;  %vm3237_vm5 = vcmask 1043459   ;;  %vm3239_vm6 = vcmask 1044484  }
   0x2   :  { %3954 = vmatprep.subr.mxu0 %v279_v0  ;;  %4384 = vmatprep.subr.mxu1 %v279_v0  ;;  %v277_v3 = vld [vmem:[%s5896_s1 + $0x8] sm:$0xff]  ;;  %v276_v4 = vld [vmem:[%s5896_s1] sm:$0xff]  ;;  %v22_v6 = vld [vmem:[%s5897_s0 + $0x10] sm:$0xff]  ;;  %vm3241_vm7 = vcmask 1045509   ;;  %vm3243_vm8 = vcmask 1046534   ;;  %vm3245_vm9 = vcmask 1047559  }
   0x3   :  { %3955 = vmatpush3.msra.mxu0 %v279_v0  ;;  %3962 = vmatprep.mubr.msk.f32.mxu0 %vm280_vm0, %v20_v2  ;;  %v21_v5 = vld [vmem:[%s5897_s0 + $0x8] sm:$0xff]  ;;  %v23_v7 = vld [vmem:[%s5897_s0 + $0x18] sm:$0xff]  ;;  %v24_v8 = vld [vmem:[%s5897_s0 + $0x20] sm:$0xff] }
   0x4   :  { %3956 = vmatprep.subr.mxu0 %v278_v1  ;;  %4388 = vmatpush3.msra.mxu1 %v279_v0  ;;  %v154_v9 = vld [vmem:[%s5897_s0 + $0x430] sm:$0xff]  ;;  %v155_v10 = vld [vmem:[%s5897_s0 + $0x438] sm:$0xff]  ;;  %v25_v11 = vld [vmem:[%s5897_s0 + $0x28] sm:$0xff] }
   0x5   :  { %3957 = vmatpush3.msra.mxu0 %v278_v1  ;;  %4385 = vmatprep.subr.mxu1 %v278_v1  ;;  %v156_v12 = vld [vmem:[%s5897_s0 + $0x440] sm:$0xff]  ;;  %v26_v13 = vld [vmem:[%s5897_s0 + $0x30] sm:$0xff]  ;;  %v157_v14 = vld [vmem:[%s5897_s0 + $0x448] sm:$0xff] }
   0x6   :  { %3958 = vmatprep.subr.mxu0 %v277_v3  ;;  %4389 = vmatpush3.msra.mxu1 %v278_v1  ;;  %v158_v15 = vld [vmem:[%s5897_s0 + $0x450] sm:$0xff]  ;;  %v27_v16 = vld [vmem:[%s5897_s0 + $0x38] sm:$0xff]  ;;  %v28_v17 = vld [vmem:[%s5897_s0 + $0x40] sm:$0xff] }
   0x7   :  { %3959 = vmatpush3.msra.mxu0 %v277_v3  ;;  %4386 = vmatprep.subr.mxu1 %v277_v3  ;;  %v159_v18 = vld [vmem:[%s5897_s0 + $0x458] sm:$0xff]  ;;  %v160_v19 = vld [vmem:[%s5897_s0 + $0x460] sm:$0xff]  ;;  %v29_v20 = vld [vmem:[%s5897_s0 + $0x48] sm:$0xff] }
   0x8   :  { %3960 = vmatprep.subr.mxu0 %v276_v4  ;;  %4390 = vmatpush3.msra.mxu1 %v277_v3  ;;  %v30_v21 = vld [vmem:[%s5897_s0 + $0x50] sm:$0xff]  ;;  %v161_v22 = vld [vmem:[%s5897_s0 + $0x468] sm:$0xff]  ;;  %v31_v24 = vld [vmem:[%s5897_s0 + $0x58] sm:$0xff] }
   0x9   :  { %3961 = vmatpush3.msra.mxu0 %v276_v4  ;;  %4387 = vmatprep.subr.mxu1 %v276_v4  ;;  %v162_v23 = vld [vmem:[%s5897_s0 + $0x470] sm:$0xff]  ;;  %v32_v25 = vld [vmem:[%s5897_s0 + $0x60] sm:$0xff]  ;;  %v163_v26 = vld [vmem:[%s5897_s0 + $0x478] sm:$0xff] }
   0xa   :  { %3963 = vmatmul.mubr.msk.f32.vlgmr.msra.gmra.mxu0 %vm280_vm0, %v21_v5  ;;  %4391 = vmatpush3.msra.mxu1 %v276_v4  ;;  %v164_v27 = vld [vmem:[%s5897_s0 + $0x480] sm:$0xff]  ;;  %v33_v28 = vld [vmem:[%s5897_s0 + $0x68] sm:$0xff]  ;;  %v34_v29 = vld [vmem:[%s5897_s0 + $0x70] sm:$0xff] }
   0xb   :  { %3965 = vmatprep.mubr.msk.f32.mxu0 %vm280_vm0, %v22_v6  ;;  %4163 = vmatprep.mubr.msk.f32.mxu1 %vm280_vm0, %v154_v9  ;;  %v165_v30 = vld [vmem:[%s5897_s0 + $0x488] sm:$0xff]  ;;  %v166_v31 = vld [vmem:[%s5897_s0 + $0x490] sm:$0xff]  ;;  %v35_v32 = vld [vmem:[%s5897_s0 + $0x78] sm:$0xff] }
   0xc   :  { %4164 = vmatmul.mubr.msk.f32.vlgmr.msra.gmra.mxu1 %vm280_vm0, %v155_v10  ;;  %v36_v33 = vld [vmem:[%s5897_s0 + $0x80] sm:$0xff]  ;;  %v167_v34 = vld [vmem:[%s5897_s0 + $0x498] sm:$0xff]  ;;  %v37_v36 = vld [vmem:[%s5897_s0 + $0x88] sm:$0xff] }
   0xd   :  { %4166 = vmatprep.mubr.msk.f32.mxu1 %vm280_vm0, %v156_v12  ;;  %v168_v35 = vld [vmem:[%s5897_s0 + $0x4a0] sm:$0xff]  ;;  %v38_v37 = vld [vmem:[%s5897_s0 + $0x90] sm:$0xff]  ;;  %v169_v38 = vld [vmem:[%s5897_s0 + $0x4a8] sm:$0xff] }
   0xe   :  { %3966 = vmatmul.mubr.msk.f32.gmra.mxu0 %vm280_vm0, %v23_v7  ;;  %v170_v39 = vld [vmem:[%s5897_s0 + $0x4b0] sm:$0xff]  ;;  %v39_v40 = vld [vmem:[%s5897_s0 + $0x98] sm:$0xff]  ;;  %v40_v41 = vld [vmem:[%s5897_s0 + $0xa0] sm:$0xff] }
   0xf   :  { %3968 = vmatprep.mubr.msk.f32.mxu0 %vm280_vm0, %v24_v8  ;;  %v171_v42 = vld [vmem:[%s5897_s0 + $0x4b8] sm:$0xff]  ;;  %v172_v43 = vld [vmem:[%s5897_s0 + $0x4c0] sm:$0xff]  ;;  %v41_v44 = vld [vmem:[%s5897_s0 + $0xa8] sm:$0xff] }
  0x10   :  { %4167 = vmatmul.mubr.msk.f32.gmra.mxu1 %vm280_vm0, %v157_v14  ;;  %v42_v45 = vld [vmem:[%s5897_s0 + $0xb0] sm:$0xff]  ;;  %v173_v46 = vld [vmem:[%s5897_s0 + $0x4c8] sm:$0xff]  ;;  %v43_v48 = vld [vmem:[%s5897_s0 + $0xb8] sm:$0xff] }
  0x11   :  { %4169 = vmatprep.mubr.msk.f32.mxu1 %vm280_vm0, %v158_v15  ;;  %v174_v47 = vld [vmem:[%s5897_s0 + $0x4d0] sm:$0xff]  ;;  %v44_v49 = vld [vmem:[%s5897_s0 + $0xc0] sm:$0xff]  ;;  %v175_v50 = vld [vmem:[%s5897_s0 + $0x4d8] sm:$0xff] }
  0x12   :  { %3969 = vmatmul.mubr.msk.f32.gmra.mxu0 %vm280_vm0, %v25_v11  ;;  %v176_v51 = vld [vmem:[%s5897_s0 + $0x4e0] sm:$0xff]  ;;  %v45_v52 = vld [vmem:[%s5897_s0 + $0xc8] sm:$0xff]  ;;  %v46_v53 = vld [vmem:[%s5897_s0 + $0xd0] sm:$0xff] }
  0x13   :  { %3971 = vmatprep.mubr.msk.f32.mxu0 %vm280_vm0, %v26_v13  ;;  %v177_v54 = vld [vmem:[%s5897_s0 + $0x4e8] sm:$0xff]  ;;  %v178_v55 = vld [vmem:[%s5897_s0 + $0x4f0] sm:$0xff]  ;;  %v47_v56 = vld [vmem:[%s5897_s0 + $0xd8] sm:$0xff] }
  0x14   :  { %4170 = vmatmul.mubr.msk.f32.gmra.mxu1 %vm280_vm0, %v159_v18  ;;  %v48_v57 = vld [vmem:[%s5897_s0 + $0xe0] sm:$0xff]  ;;  %v179_v58 = vld [vmem:[%s5897_s0 + $0x4f8] sm:$0xff]  ;;  %v49_v60 = vld [vmem:[%s5897_s0 + $0xe8] sm:$0xff] }
  0x15   :  { %4172 = vmatprep.mubr.msk.f32.mxu1 %vm280_vm0, %v160_v19  ;;  %v180_v59 = vld [vmem:[%s5897_s0 + $0x500] sm:$0xff]  ;;  %v50_v61 = vld [vmem:[%s5897_s0 + $0xf0] sm:$0xff]  ;;  %v181_v62 = vld [vmem:[%s5897_s0 + $0x508] sm:$0xff] }
  0x16   :  { %3972 = vmatmul.mubr.msk.f32.gmra.mxu0 %vm280_vm0, %v27_v16  ;;  %v182_v63 = vld [vmem:[%s5897_s0 + $0x510] sm:$0xff]  ;;  %v51_v0 = vld [vmem:[%s5897_s0 + $0xf8] sm:$0xff]  ;;  %v52_v1 = vld [vmem:[%s5897_s0 + $0x100] sm:$0xff] }
  0x17   :  { %3974 = vmatprep.mubr.msk.f32.mxu0 %vm280_vm0, %v28_v17  ;;  %v183_v2 = vld [vmem:[%s5897_s0 + $0x518] sm:$0xff]  ;;  %v184_v3 = vld [vmem:[%s5897_s0 + $0x520] sm:$0xff]  ;;  %v53_v4 = vld [vmem:[%s5897_s0 + $0x108] sm:$0xff] }
  0x18   :  { %4173 = vmatmul.mubr.msk.f32.gmra.mxu1 %vm280_vm0, %v161_v22  ;;  %v54_v5 = vld [vmem:[%s5897_s0 + $0x110] sm:$0xff]  ;;  %v185_v6 = vld [vmem:[%s5897_s0 + $0x528] sm:$0xff]  ;;  %v55_v8 = vld [vmem:[%s5897_s0 + $0x118] sm:$0xff] }
  0x19   :  { %4175 = vmatprep.mubr.msk.f32.mxu1 %vm280_vm0, %v162_v23  ;;  %v186_v7 = vld [vmem:[%s5897_s0 + $0x530] sm:$0xff]  ;;  %v56_v9 = vld [vmem:[%s5897_s0 + $0x120] sm:$0xff]  ;;  %v187_v10 = vld [vmem:[%s5897_s0 + $0x538] sm:$0xff] }
  0x1a   :  { %3975 = vmatmul.mubr.msk.f32.gmra.mxu0 %vm280_vm0, %v29_v20  ;;  %v188_v11 = vld [vmem:[%s5897_s0 + $0x540] sm:$0xff]  ;;  %v57_v12 = vld [vmem:[%s5897_s0 + $0x128] sm:$0xff]  ;;  %v58_v13 = vld [vmem:[%s5897_s0 + $0x130] sm:$0xff] }
  0x1b   :  { %3977 = vmatprep.mubr.msk.f32.mxu0 %vm280_vm0, %v30_v21  ;;  %v189_v14 = vld [vmem:[%s5897_s0 + $0x548] sm:$0xff]  ;;  %v190_v15 = vld [vmem:[%s5897_s0 + $0x550] sm:$0xff]  ;;  %v59_v16 = vld [vmem:[%s5897_s0 + $0x138] sm:$0xff] }
  0x1c   :  { %4176 = vmatmul.mubr.msk.f32.gmra.mxu1 %vm280_vm0, %v163_v26  ;;  %v60_v17 = vld [vmem:[%s5897_s0 + $0x140] sm:$0xff]  ;;  %v191_v18 = vld [vmem:[%s5897_s0 + $0x558] sm:$0xff]  ;;  %v61_v20 = vld [vmem:[%s5897_s0 + $0x148] sm:$0xff] }
  0x1d   :  { %4178 = vmatprep.mubr.msk.f32.mxu1 %vm280_vm0, %v164_v27  ;;  %v192_v19 = vld [vmem:[%s5897_s0 + $0x560] sm:$0xff]  ;;  %v62_v21 = vld [vmem:[%s5897_s0 + $0x150] sm:$0xff]  ;;  %v193_v22 = vld [vmem:[%s5897_s0 + $0x568] sm:$0xff] }
  0x1e   :  { %3978 = vmatmul.mubr.msk.f32.gmra.mxu0 %vm280_vm0, %v31_v24  ;;  %v194_v23 = vld [vmem:[%s5897_s0 + $0x570] sm:$0xff]  ;;  %v63_v24 = vld [vmem:[%s5897_s0 + $0x158] sm:$0xff]  ;;  %v196_v27 = vld [vmem:[%s5897_s0 + $0x580] sm:$0xff] }
  0x1f   :  { %3980 = vmatprep.mubr.msk.f32.mxu0 %vm280_vm0, %v32_v25  ;;  %v64_v25 = vld [vmem:[%s5897_s0 + $0x160] sm:$0xff]  ;;  %v195_v26 = vld [vmem:[%s5897_s0 + $0x578] sm:$0xff] }
  0x20   :  { %4179 = vmatmul.mubr.msk.f32.gmra.mxu1 %vm280_vm0, %v165_v30  ;;  %v197_v30 = vld [vmem:[%s5897_s0 + $0x588] sm:$0xff] }
  0x21   :  { %4181 = vmatprep.mubr.msk.f32.mxu1 %vm280_vm0, %v166_v31  ;;  %v198_v31 = vld [vmem:[%s5897_s0 + $0x590] sm:$0xff] }
  0x22   :  { %3981 = vmatmul.mubr.msk.f32.gmra.mxu0 %vm280_vm0, %v33_v28  ;;  %v65_v28 = vld [vmem:[%s5897_s0 + $0x168] sm:$0xff] }
  0x23   :  { %3983 = vmatprep.mubr.msk.f32.mxu0 %vm280_vm0, %v34_v29  ;;  %v66_v29 = vld [vmem:[%s5897_s0 + $0x170] sm:$0xff] }
  0x24   :  { %4182 = vmatmul.mubr.msk.f32.gmra.mxu1 %vm280_vm0, %v167_v34  ;;  %v199_v34 = vld [vmem:[%s5897_s0 + $0x598] sm:$0xff] }
  0x25   :  { %4184 = vmatprep.mubr.msk.f32.mxu1 %vm280_vm0, %v168_v35  ;;  %v200_v35 = vld [vmem:[%s5897_s0 + $0x5a0] sm:$0xff] }
  0x26   :  { %3984 = vmatmul.mubr.msk.f32.gmra.mxu0 %vm280_vm0, %v35_v32  ;;  %v67_v32 = vld [vmem:[%s5897_s0 + $0x178] sm:$0xff] }
  0x27   :  { %3986 = vmatprep.mubr.msk.f32.mxu0 %vm280_vm0, %v36_v33  ;;  %v68_v33 = vld [vmem:[%s5897_s0 + $0x180] sm:$0xff] }
  0x28   :  { %4185 = vmatmul.mubr.msk.f32.gmra.mxu1 %vm280_vm0, %v169_v38  ;;  %v201_v38 = vld [vmem:[%s5897_s0 + $0x5a8] sm:$0xff] }
  0x29   :  { %4187 = vmatprep.mubr.msk.f32.mxu1 %vm280_vm0, %v170_v39  ;;  %v202_v39 = vld [vmem:[%s5897_s0 + $0x5b0] sm:$0xff] }
  0x2a   :  { %3987 = vmatmul.mubr.msk.f32.gmra.mxu0 %vm280_vm0, %v37_v36  ;;  %v69_v36 = vld [vmem:[%s5897_s0 + $0x188] sm:$0xff] }
  0x2b   :  { %3989 = vmatprep.mubr.msk.f32.mxu0 %vm280_vm0, %v38_v37  ;;  %v70_v37 = vld [vmem:[%s5897_s0 + $0x190] sm:$0xff] }
  0x2c   :  { %4188 = vmatmul.mubr.msk.f32.gmra.mxu1 %vm280_vm0, %v171_v42  ;;  %v203_v42 = vld [vmem:[%s5897_s0 + $0x5b8] sm:$0xff] }
  0x2d   :  { %4190 = vmatprep.mubr.msk.f32.mxu1 %vm280_vm0, %v172_v43  ;;  %v204_v43 = vld [vmem:[%s5897_s0 + $0x5c0] sm:$0xff] }
  0x2e   :  { %3990 = vmatmul.mubr.msk.f32.gmra.mxu0 %vm280_vm0, %v39_v40  ;;  %v71_v40 = vld [vmem:[%s5897_s0 + $0x198] sm:$0xff] }
  0x2f   :  { %3992 = vmatprep.mubr.msk.f32.mxu0 %vm280_vm0, %v40_v41  ;;  %v72_v41 = vld [vmem:[%s5897_s0 + $0x1a0] sm:$0xff] }
  0x30   :  { %4191 = vmatmul.mubr.msk.f32.gmra.mxu1 %vm280_vm0, %v173_v46  ;;  %v205_v46 = vld [vmem:[%s5897_s0 + $0x5c8] sm:$0xff] }
  0x31   :  { %4193 = vmatprep.mubr.msk.f32.mxu1 %vm280_vm0, %v174_v47  ;;  %v206_v47 = vld [vmem:[%s5897_s0 + $0x5d0] sm:$0xff] }
  0x32   :  { %3993 = vmatmul.mubr.msk.f32.gmra.mxu0 %vm280_vm0, %v41_v44  ;;  %v73_v44 = vld [vmem:[%s5897_s0 + $0x1a8] sm:$0xff] }
  0x33   :  { %3995 = vmatprep.mubr.msk.f32.mxu0 %vm280_vm0, %v42_v45  ;;  %v74_v45 = vld [vmem:[%s5897_s0 + $0x1b0] sm:$0xff] }
  0x34   :  { %4194 = vmatmul.mubr.msk.f32.gmra.mxu1 %vm280_vm0, %v175_v50  ;;  %v207_v50 = vld [vmem:[%s5897_s0 + $0x5d8] sm:$0xff] }
  0x35   :  { %4196 = vmatprep.mubr.msk.f32.mxu1 %vm280_vm0, %v176_v51  ;;  %v208_v51 = vld [vmem:[%s5897_s0 + $0x5e0] sm:$0xff] }
  0x36   :  { %3996 = vmatmul.mubr.msk.f32.gmra.mxu0 %vm280_vm0, %v43_v48  ;;  %v75_v48 = vld [vmem:[%s5897_s0 + $0x1b8] sm:$0xff] }
  0x37   :  { %3998 = vmatprep.mubr.msk.f32.mxu0 %vm280_vm0, %v44_v49  ;;  %v76_v49 = vld [vmem:[%s5897_s0 + $0x1c0] sm:$0xff] }
  0x38   :  { %4197 = vmatmul.mubr.msk.f32.gmra.mxu1 %vm280_vm0, %v177_v54  ;;  %v209_v54 = vld [vmem:[%s5897_s0 + $0x5e8] sm:$0xff] }
  0x39   :  { %4199 = vmatprep.mubr.msk.f32.mxu1 %vm280_vm0, %v178_v55  ;;  %v210_v55 = vld [vmem:[%s5897_s0 + $0x5f0] sm:$0xff] }
  0x3a   :  { %3999 = vmatmul.mubr.msk.f32.gmra.mxu0 %vm280_vm0, %v45_v52  ;;  %v77_v52 = vld [vmem:[%s5897_s0 + $0x1c8] sm:$0xff] }
  0x3b   :  { %4001 = vmatprep.mubr.msk.f32.mxu0 %vm280_vm0, %v46_v53  ;;  %v78_v53 = vld [vmem:[%s5897_s0 + $0x1d0] sm:$0xff] }
  0x3c   :  { %4200 = vmatmul.mubr.msk.f32.gmra.mxu1 %vm280_vm0, %v179_v58  ;;  %v211_v58 = vld [vmem:[%s5897_s0 + $0x5f8] sm:$0xff] }
  0x3d   :  { %4202 = vmatprep.mubr.msk.f32.mxu1 %vm280_vm0, %v180_v59  ;;  %v212_v59 = vld [vmem:[%s5897_s0 + $0x600] sm:$0xff] }
  0x3e   :  { %4002 = vmatmul.mubr.msk.f32.gmra.mxu0 %vm280_vm0, %v47_v56  ;;  %v79_v56 = vld [vmem:[%s5897_s0 + $0x1d8] sm:$0xff] }
  0x3f   :  { %4004 = vmatprep.mubr.msk.f32.mxu0 %vm280_vm0, %v48_v57  ;;  %v80_v57 = vld [vmem:[%s5897_s0 + $0x1e0] sm:$0xff] }
  0x40   :  { %4203 = vmatmul.mubr.msk.f32.gmra.mxu1 %vm280_vm0, %v181_v62  ;;  %v213_v62 = vld [vmem:[%s5897_s0 + $0x608] sm:$0xff] }
  0x41   :  { %4205 = vmatprep.mubr.msk.f32.mxu1 %vm280_vm0, %v182_v63  ;;  %v214_v63 = vld [vmem:[%s5897_s0 + $0x610] sm:$0xff] }
  0x42   :  { %4005 = vmatmul.mubr.msk.f32.gmra.mxu0 %vm280_vm0, %v49_v60  ;;  %v81_v60 = vld [vmem:[%s5897_s0 + $0x1e8] sm:$0xff] }
  0x43   :  { %4007 = vmatprep.mubr.msk.f32.mxu0 %vm280_vm0, %v50_v61  ;;  %v82_v61 = vld [vmem:[%s5897_s0 + $0x1f0] sm:$0xff] }
  0x44   :  { %4206 = vmatmul.mubr.msk.f32.gmra.mxu1 %vm280_vm0, %v183_v2  ;;  %v215_v2 = vld [vmem:[%s5897_s0 + $0x618] sm:$0xff] }
  0x45   :  { %4208 = vmatprep.mubr.msk.f32.mxu1 %vm280_vm0, %v184_v3  ;;  %v216_v3 = vld [vmem:[%s5897_s0 + $0x620] sm:$0xff] }
  0x46   :  { %4008 = vmatmul.mubr.msk.f32.gmra.mxu0 %vm280_vm0, %v51_v0  ;;  %v83_v0 = vld [vmem:[%s5897_s0 + $0x1f8] sm:$0xff] }
  0x47   :  { %4010 = vmatprep.mubr.msk.f32.mxu0 %vm280_vm0, %v52_v1  ;;  %v84_v1 = vld [vmem:[%s5897_s0 + $0x200] sm:$0xff] }
  0x48   :  { %4209 = vmatmul.mubr.msk.f32.gmra.mxu1 %vm280_vm0, %v185_v6  ;;  %v217_v6 = vld [vmem:[%s5897_s0 + $0x628] sm:$0xff] }
  0x49   :  { %4211 = vmatprep.mubr.msk.f32.mxu1 %vm280_vm0, %v186_v7  ;;  %v218_v7 = vld [vmem:[%s5897_s0 + $0x630] sm:$0xff] }
  0x4a   :  { %4011 = vmatmul.mubr.msk.f32.gmra.mxu0 %vm280_vm0, %v53_v4  ;;  %v85_v4 = vld [vmem:[%s5897_s0 + $0x208] sm:$0xff] }
  0x4b   :  { %4013 = vmatprep.mubr.msk.f32.mxu0 %vm280_vm0, %v54_v5  ;;  %v86_v5 = vld [vmem:[%s5897_s0 + $0x210] sm:$0xff] }
  0x4c   :  { %4212 = vmatmul.mubr.msk.f32.gmra.mxu1 %vm280_vm0, %v187_v10  ;;  %v219_v10 = vld [vmem:[%s5897_s0 + $0x638] sm:$0xff] }
  0x4d   :  { %4214 = vmatprep.mubr.msk.f32.mxu1 %vm280_vm0, %v188_v11  ;;  %v220_v11 = vld [vmem:[%s5897_s0 + $0x640] sm:$0xff] }
  0x4e   :  { %4014 = vmatmul.mubr.msk.f32.gmra.mxu0 %vm280_vm0, %v55_v8  ;;  %v87_v8 = vld [vmem:[%s5897_s0 + $0x218] sm:$0xff] }
  0x4f   :  { %4016 = vmatprep.mubr.msk.f32.mxu0 %vm280_vm0, %v56_v9  ;;  %v88_v9 = vld [vmem:[%s5897_s0 + $0x220] sm:$0xff] }
  0x50   :  { %4215 = vmatmul.mubr.msk.f32.gmra.mxu1 %vm280_vm0, %v189_v14  ;;  %v221_v14 = vld [vmem:[%s5897_s0 + $0x648] sm:$0xff] }
  0x51   :  { %4217 = vmatprep.mubr.msk.f32.mxu1 %vm280_vm0, %v190_v15  ;;  %v222_v15 = vld [vmem:[%s5897_s0 + $0x650] sm:$0xff] }
  0x52   :  { %4017 = vmatmul.mubr.msk.f32.gmra.mxu0 %vm280_vm0, %v57_v12  ;;  %v89_v12 = vld [vmem:[%s5897_s0 + $0x228] sm:$0xff] }
  0x53   :  { %4019 = vmatprep.mubr.msk.f32.mxu0 %vm280_vm0, %v58_v13  ;;  %v90_v13 = vld [vmem:[%s5897_s0 + $0x230] sm:$0xff] }
  0x54   :  { %4218 = vmatmul.mubr.msk.f32.gmra.mxu1 %vm280_vm0, %v191_v18  ;;  %v223_v18 = vld [vmem:[%s5897_s0 + $0x658] sm:$0xff] }
  0x55   :  { %4220 = vmatprep.mubr.msk.f32.mxu1 %vm280_vm0, %v192_v19  ;;  %v224_v19 = vld [vmem:[%s5897_s0 + $0x660] sm:$0xff] }
  0x56   :  { %4020 = vmatmul.mubr.msk.f32.gmra.mxu0 %vm280_vm0, %v59_v16  ;;  %v91_v16 = vld [vmem:[%s5897_s0 + $0x238] sm:$0xff] }
  0x57   :  { %4022 = vmatprep.mubr.msk.f32.mxu0 %vm280_vm0, %v60_v17  ;;  %v92_v17 = vld [vmem:[%s5897_s0 + $0x240] sm:$0xff] }
  0x58   :  { %4221 = vmatmul.mubr.msk.f32.gmra.mxu1 %vm280_vm0, %v193_v22  ;;  %v225_v22 = vld [vmem:[%s5897_s0 + $0x668] sm:$0xff] }
  0x59   :  { %4223 = vmatprep.mubr.msk.f32.mxu1 %vm280_vm0, %v194_v23  ;;  %v226_v23 = vld [vmem:[%s5897_s0 + $0x670] sm:$0xff] }
  0x5a   :  { %4023 = vmatmul.mubr.msk.f32.gmra.mxu0 %vm280_vm0, %v61_v20  ;;  %v93_v20 = vld [vmem:[%s5897_s0 + $0x248] sm:$0xff] }
  0x5b   :  { %4025 = vmatprep.mubr.msk.f32.mxu0 %vm280_vm0, %v62_v21  ;;  %v94_v21 = vld [vmem:[%s5897_s0 + $0x250] sm:$0xff] }
  0x5c   :  { %4224 = vmatmul.mubr.msk.f32.gmra.mxu1 %vm280_vm0, %v195_v26  ;;  %v227_v26 = vld [vmem:[%s5897_s0 + $0x678] sm:$0xff] }
  0x5d   :  { %4226 = vmatprep.mubr.msk.f32.mxu1 %vm280_vm0, %v196_v27  ;;  %v228_v27 = vld [vmem:[%s5897_s0 + $0x680] sm:$0xff] }
  0x5e   :  { %4026 = vmatmul.mubr.msk.f32.gmra.mxu0 %vm280_vm0, %v63_v24  ;;  %v95_v24 = vld [vmem:[%s5897_s0 + $0x258] sm:$0xff] }
  0x5f   :  { %4028 = vmatprep.mubr.msk.f32.mxu0 %vm280_vm0, %v64_v25  ;;  %v96_v25 = vld [vmem:[%s5897_s0 + $0x260] sm:$0xff] }
  0x60   :  { %4227 = vmatmul.mubr.msk.f32.gmra.mxu1 %vm280_vm0, %v197_v30  ;;  %v229_v30 = vld [vmem:[%s5897_s0 + $0x688] sm:$0xff] }
  0x61   :  { %4229 = vmatprep.mubr.msk.f32.mxu1 %vm280_vm0, %v198_v31  ;;  %v230_v31 = vld [vmem:[%s5897_s0 + $0x690] sm:$0xff] }
  0x62   :  { %4029 = vmatmul.mubr.msk.f32.gmra.mxu0 %vm280_vm0, %v65_v28  ;;  %v97_v28 = vld [vmem:[%s5897_s0 + $0x268] sm:$0xff] }
  0x63   :  { %4031 = vmatprep.mubr.msk.f32.mxu0 %vm280_vm0, %v66_v29  ;;  %v98_v29 = vld [vmem:[%s5897_s0 + $0x270] sm:$0xff] }
  0x64   :  { %4230 = vmatmul.mubr.msk.f32.gmra.mxu1 %vm280_vm0, %v199_v34  ;;  %v231_v34 = vld [vmem:[%s5897_s0 + $0x698] sm:$0xff] }
  0x65   :  { %4232 = vmatprep.mubr.msk.f32.mxu1 %vm280_vm0, %v200_v35  ;;  %v232_v35 = vld [vmem:[%s5897_s0 + $0x6a0] sm:$0xff] }
  0x66   :  { %4032 = vmatmul.mubr.msk.f32.gmra.mxu0 %vm280_vm0, %v67_v32  ;;  %v99_v32 = vld [vmem:[%s5897_s0 + $0x278] sm:$0xff] }
  0x67   :  { %4034 = vmatprep.mubr.msk.f32.mxu0 %vm280_vm0, %v68_v33  ;;  %v100_v33 = vld [vmem:[%s5897_s0 + $0x280] sm:$0xff] }
  0x68   :  { %4233 = vmatmul.mubr.msk.f32.gmra.mxu1 %vm280_vm0, %v201_v38  ;;  %v233_v38 = vld [vmem:[%s5897_s0 + $0x6a8] sm:$0xff] }
  0x69   :  { %4235 = vmatprep.mubr.msk.f32.mxu1 %vm280_vm0, %v202_v39  ;;  %v234_v39 = vld [vmem:[%s5897_s0 + $0x6b0] sm:$0xff] }
  0x6a   :  { %4035 = vmatmul.mubr.msk.f32.gmra.mxu0 %vm280_vm0, %v69_v36  ;;  %v101_v36 = vld [vmem:[%s5897_s0 + $0x288] sm:$0xff] }
  0x6b   :  { %4037 = vmatprep.mubr.msk.f32.mxu0 %vm280_vm0, %v70_v37  ;;  %v102_v37 = vld [vmem:[%s5897_s0 + $0x290] sm:$0xff] }
  0x6c   :  { %4236 = vmatmul.mubr.msk.f32.gmra.mxu1 %vm280_vm0, %v203_v42  ;;  %v235_v42 = vld [vmem:[%s5897_s0 + $0x6b8] sm:$0xff] }
  0x6d   :  { %4238 = vmatprep.mubr.msk.f32.mxu1 %vm280_vm0, %v204_v43  ;;  %v236_v43 = vld [vmem:[%s5897_s0 + $0x6c0] sm:$0xff] }
  0x6e   :  { %4038 = vmatmul.mubr.msk.f32.gmra.mxu0 %vm280_vm0, %v71_v40  ;;  %v103_v40 = vld [vmem:[%s5897_s0 + $0x298] sm:$0xff] }
  0x6f   :  { %4040 = vmatprep.mubr.msk.f32.mxu0 %vm280_vm0, %v72_v41  ;;  %v104_v41 = vld [vmem:[%s5897_s0 + $0x2a0] sm:$0xff] }
  0x70   :  { %4239 = vmatmul.mubr.msk.f32.gmra.mxu1 %vm280_vm0, %v205_v46  ;;  %v237_v46 = vld [vmem:[%s5897_s0 + $0x6c8] sm:$0xff] }
  0x71   :  { %4241 = vmatprep.mubr.msk.f32.mxu1 %vm280_vm0, %v206_v47  ;;  %v4395_v47 = vmov 0.0  }
  0x72   :  { %4041 = vmatmul.mubr.msk.f32.gmra.mxu0 %vm280_vm0, %v73_v44  ;;  %v105_v44 = vld [vmem:[%s5897_s0 + $0x2a8] sm:$0xff]  ;;  %4346 = vmatprep.subr.mxu1 %v4395_v47 }
  0x73   :  { %4043 = vmatprep.mubr.msk.f32.mxu0 %vm280_vm0, %v74_v45  ;;  %v106_v45 = vld [vmem:[%s5897_s0 + $0x2b0] sm:$0xff] }
  0x74   :  { %4242 = vmatmul.mubr.msk.f32.gmra.mxu1 %vm280_vm0, %v207_v50  ;;  %v107_v50 = vld [vmem:[%s5897_s0 + $0x2b8] sm:$0xff] }
  0x75   :  { %4244 = vmatprep.mubr.msk.f32.mxu1 %vm280_vm0, %v208_v51  ;;  %v108_v51 = vld [vmem:[%s5897_s0 + $0x2c0] sm:$0xff] }
  0x76   :  { %4044 = vmatmul.mubr.msk.f32.gmra.mxu0 %vm280_vm0, %v75_v48  ;;  %v238_v48 = vld [vmem:[%s5897_s0 + $0x6d0] sm:$0xff] }
  0x77   :  { %4046 = vmatprep.mubr.msk.f32.mxu0 %vm280_vm0, %v76_v49  ;;  %v3220_v49 = vld [vmem:[%s5898_s2 + $0x38] sm:$0xff] }
  0x78   :  { %4245 = vmatmul.mubr.msk.f32.gmra.mxu1 %vm280_vm0, %v209_v54  ;;  %v109_v54 = vld [vmem:[%s5897_s0 + $0x2c8] sm:$0xff] }
  0x79   :  { %4247 = vmatprep.mubr.msk.f32.mxu1 %vm280_vm0, %v210_v55  ;;  %4347 = vmatpush3.msra.mxu1 %v3220_v49  ;;  %v110_v55 = vld [vmem:[%s5897_s0 + $0x2d0] sm:$0xff] }
  0x7a   :  { %4047 = vmatmul.mubr.msk.f32.gmra.mxu0 %vm280_vm0, %v77_v52  ;;  %4348 = vmatprep.subr.mxu1 %v4395_v47  ;;  %v239_v52 = vld [vmem:[%s5897_s0 + $0x6d8] sm:$0xff] }
  0x7b   :  { %4049 = vmatprep.mubr.msk.f32.mxu0 %vm280_vm0, %v78_v53  ;;  %v240_v53 = vld [vmem:[%s5897_s0 + $0x6e0] sm:$0xff] }
  0x7c   :  { %4248 = vmatmul.mubr.msk.f32.gmra.mxu1 %vm280_vm0, %v211_v58  ;;  %v111_v58 = vld [vmem:[%s5897_s0 + $0x2d8] sm:$0xff] }
  0x7d   :  { %4250 = vmatprep.mubr.msk.f32.mxu1 %vm280_vm0, %v212_v59  ;;  %v112_v59 = vld [vmem:[%s5897_s0 + $0x2e0] sm:$0xff] }
  0x7e   :  { %4050 = vmatmul.mubr.msk.f32.gmra.mxu0 %vm280_vm0, %v79_v56  ;;  %v241_v56 = vld [vmem:[%s5897_s0 + $0x6e8] sm:$0xff] }
  0x7f   :  { %4052 = vmatprep.mubr.msk.f32.mxu0 %vm280_vm0, %v80_v57  ;;  %v242_v57 = vld [vmem:[%s5897_s0 + $0x6f0] sm:$0xff] }
  0x80   :  { %4251 = vmatmul.mubr.msk.f32.gmra.mxu1 %vm280_vm0, %v213_v62  ;;  %v113_v62 = vld [vmem:[%s5897_s0 + $0x2e8] sm:$0xff] }
  0x81   :  { %4253 = vmatprep.mubr.msk.f32.mxu1 %vm280_vm0, %v214_v63  ;;  %v114_v63 = vld [vmem:[%s5897_s0 + $0x2f0] sm:$0xff] }
  0x82   :  { %4053 = vmatmul.mubr.msk.f32.gmra.mxu0 %vm280_vm0, %v81_v60  ;;  %v243_v60 = vld [vmem:[%s5897_s0 + $0x6f8] sm:$0xff] }
  0x83   :  { %4055 = vmatprep.mubr.msk.f32.mxu0 %vm280_vm0, %v82_v61  ;;  %v244_v61 = vld [vmem:[%s5897_s0 + $0x700] sm:$0xff] }
  0x84   :  { %4254 = vmatmul.mubr.msk.f32.gmra.mxu1 %vm280_vm0, %v215_v2  ;;  %v115_v2 = vld [vmem:[%s5897_s0 + $0x2f8] sm:$0xff] }
  0x85   :  { %4256 = vmatprep.mubr.msk.f32.mxu1 %vm280_vm0, %v216_v3  ;;  %v116_v3 = vld [vmem:[%s5897_s0 + $0x300] sm:$0xff] }
  0x86   :  { %4056 = vmatmul.mubr.msk.f32.gmra.mxu0 %vm280_vm0, %v83_v0  ;;  %v245_v0 = vld [vmem:[%s5897_s0 + $0x708] sm:$0xff] }
  0x87   :  { %4058 = vmatprep.mubr.msk.f32.mxu0 %vm280_vm0, %v84_v1  ;;  %v246_v1 = vld [vmem:[%s5897_s0 + $0x710] sm:$0xff] }
  0x88   :  { %4257 = vmatmul.mubr.msk.f32.gmra.mxu1 %vm280_vm0, %v217_v6  ;;  %v117_v6 = vld [vmem:[%s5897_s0 + $0x308] sm:$0xff] }
  0x89   :  { %4259 = vmatprep.mubr.msk.f32.mxu1 %vm280_vm0, %v218_v7  ;;  %v118_v7 = vld [vmem:[%s5897_s0 + $0x310] sm:$0xff] }
  0x8a   :  { %4059 = vmatmul.mubr.msk.f32.gmra.mxu0 %vm280_vm0, %v85_v4  ;;  %v247_v4 = vld [vmem:[%s5897_s0 + $0x718] sm:$0xff] }
  0x8b   :  { %4061 = vmatprep.mubr.msk.f32.mxu0 %vm280_vm0, %v86_v5  ;;  %v248_v5 = vld [vmem:[%s5897_s0 + $0x720] sm:$0xff] }
  0x8c   :  { %4260 = vmatmul.mubr.msk.f32.gmra.mxu1 %vm280_vm0, %v219_v10  ;;  %v250_v10 = vld [vmem:[%s5897_s0 + $0x730] sm:$0xff] }
  0x8d   :  { %4262 = vmatprep.mubr.msk.f32.mxu1 %vm280_vm0, %v220_v11 }
  0x8e   :  { %4062 = vmatmul.mubr.msk.f32.gmra.mxu0 %vm280_vm0, %v87_v8  ;;  %v249_v8 = vld [vmem:[%s5897_s0 + $0x728] sm:$0xff] }
  0x8f   :  { %4064 = vmatprep.mubr.msk.f32.mxu0 %vm280_vm0, %v88_v9 }
  0x90   :  { %4263 = vmatmul.mubr.msk.f32.gmra.mxu1 %vm280_vm0, %v221_v14  ;;  %v120_v14 = vld [vmem:[%s5897_s0 + $0x320] sm:$0xff] }
  0x91   :  { %4265 = vmatprep.mubr.msk.f32.mxu1 %vm280_vm0, %v222_v15 }
  0x92   :  { %4065 = vmatmul.mubr.msk.f32.gmra.mxu0 %vm280_vm0, %v89_v12  ;;  %v119_v12 = vld [vmem:[%s5897_s0 + $0x318] sm:$0xff] }
  0x93   :  { %4067 = vmatprep.mubr.msk.f32.mxu0 %vm280_vm0, %v90_v13 }
  0x94   :  { %4266 = vmatmul.mubr.msk.f32.gmra.mxu1 %vm280_vm0, %v223_v18  ;;  %v252_v18 = vld [vmem:[%s5897_s0 + $0x740] sm:$0xff] }
  0x95   :  { %4268 = vmatprep.mubr.msk.f32.mxu1 %vm280_vm0, %v224_v19 }
  0x96   :  { %4068 = vmatmul.mubr.msk.f32.gmra.mxu0 %vm280_vm0, %v91_v16  ;;  %v251_v16 = vld [vmem:[%s5897_s0 + $0x738] sm:$0xff] }
  0x97   :  { %4070 = vmatprep.mubr.msk.f32.mxu0 %vm280_vm0, %v92_v17 }
  0x98   :  { %4269 = vmatmul.mubr.msk.f32.gmra.mxu1 %vm280_vm0, %v225_v22 }
  0x99   :  { %4271 = vmatprep.mubr.msk.f32.mxu1 %vm280_vm0, %v226_v23 }
  0x9a   :  { %4071 = vmatmul.mubr.msk.f32.gmra.mxu0 %vm280_vm0, %v93_v20 }
  0x9b   :  { %4073 = vmatprep.mubr.msk.f32.mxu0 %vm280_vm0, %v94_v21  ;;  %v121_v21 = vld [vmem:[%s5897_s0 + $0x328] sm:$0xff] }
  0x9c   :  { %4272 = vmatmul.mubr.msk.f32.gmra.mxu1 %vm280_vm0, %v227_v26 }
  0x9d   :  { %4274 = vmatprep.mubr.msk.f32.mxu1 %vm280_vm0, %v228_v27 }
  0x9e   :  { %4074 = vmatmul.mubr.msk.f32.gmra.mxu0 %vm280_vm0, %v95_v24  ;;  %v122_v24 = vld [vmem:[%s5897_s0 + $0x330] sm:$0xff] }
  0x9f   :  { %4076 = vmatprep.mubr.msk.f32.mxu0 %vm280_vm0, %v96_v25 }
  0xa0   :  { %4275 = vmatmul.mubr.msk.f32.gmra.mxu1 %vm280_vm0, %v229_v30 }
  0xa1   :  { %4277 = vmatprep.mubr.msk.f32.mxu1 %vm280_vm0, %v230_v31  ;;  %v254_v31 = vld [vmem:[%s5897_s0 + $0x750] sm:$0xff] }
  0xa2   :  { %4077 = vmatmul.mubr.msk.f32.gmra.mxu0 %vm280_vm0, %v97_v28  ;;  %v253_v28 = vld [vmem:[%s5897_s0 + $0x748] sm:$0xff] }
  0xa3   :  { %4079 = vmatprep.mubr.msk.f32.mxu0 %vm280_vm0, %v98_v29 }
  0xa4   :  { %4278 = vmatmul.mubr.msk.f32.gmra.mxu1 %vm280_vm0, %v231_v34 }
  0xa5   :  { %4280 = vmatprep.mubr.msk.f32.mxu1 %vm280_vm0, %v232_v35 }
  0xa6   :  { %4080 = vmatmul.mubr.msk.f32.gmra.mxu0 %vm280_vm0, %v99_v32 }
  0xa7   :  { %4082 = vmatprep.mubr.msk.f32.mxu0 %vm280_vm0, %v100_v33  ;;  %v123_v33 = vld [vmem:[%s5897_s0 + $0x338] sm:$0xff] }
  0xa8   :  { %4281 = vmatmul.mubr.msk.f32.gmra.mxu1 %vm280_vm0, %v233_v38 }
  0xa9   :  { %4283 = vmatprep.mubr.msk.f32.mxu1 %vm280_vm0, %v234_v39 }
  0xaa   :  { %4083 = vmatmul.mubr.msk.f32.gmra.mxu0 %vm280_vm0, %v101_v36  ;;  %v124_v36 = vld [vmem:[%s5897_s0 + $0x340] sm:$0xff] }
  0xab   :  { %4085 = vmatprep.mubr.msk.f32.mxu0 %vm280_vm0, %v102_v37 }
  0xac   :  { %4284 = vmatmul.mubr.msk.f32.gmra.mxu1 %vm280_vm0, %v235_v42 }
  0xad   :  { %4286 = vmatprep.mubr.msk.f32.mxu1 %vm280_vm0, %v236_v43 }
  0xae   :  { %4086 = vmatmul.mubr.msk.f32.gmra.mxu0 %vm280_vm0, %v103_v40 }
  0xaf   :  { %4088 = vmatprep.mubr.msk.f32.mxu0 %vm280_vm0, %v104_v41  ;;  %v255_v41 = vld [vmem:[%s5897_s0 + $0x758] sm:$0xff] }
  0xb0   :  { %4287 = vmatmul.mubr.msk.f32.gmra.mxu1 %vm280_vm0, %v237_v46 }
  0xb1   :  { %4289 = vmatprep.mubr.msk.f32.mxu1 %vm280_vm0, %v238_v48  ;;  %v125_v48 = vld [vmem:[%s5897_s0 + $0x348] sm:$0xff] }
  0xb2   :  { %4089 = vmatmul.mubr.msk.f32.gmra.mxu0 %vm280_vm0, %v105_v44 }
  0xb3   :  { %4091 = vmatprep.mubr.msk.f32.mxu0 %vm280_vm0, %v106_v45  ;;  %v256_v45 = vld [vmem:[%s5897_s0 + $0x760] sm:$0xff] }
  0xb4   :  { %4290 = vmatmul.mubr.msk.f32.gmra.mxu1 %vm280_vm0, %v239_v52 }
  0xb5   :  { %4292 = vmatprep.mubr.msk.f32.mxu1 %vm280_vm0, %v240_v53 }
  0xb6   :  { %4092 = vmatmul.mubr.msk.f32.gmra.mxu0 %vm280_vm0, %v107_v50 }
  0xb7   :  { %4094 = vmatprep.mubr.msk.f32.mxu0 %vm280_vm0, %v108_v51  ;;  %v126_v51 = vld [vmem:[%s5897_s0 + $0x350] sm:$0xff] }
  0xb8   :  { %4293 = vmatmul.mubr.msk.f32.gmra.mxu1 %vm280_vm0, %v241_v56  ;;  %v257_v56 = vld [vmem:[%s5897_s0 + $0x768] sm:$0xff] }
  0xb9   :  { %4295 = vmatprep.mubr.msk.f32.mxu1 %vm280_vm0, %v242_v57 }
  0xba   :  { %4095 = vmatmul.mubr.msk.f32.gmra.mxu0 %vm280_vm0, %v109_v54 }
  0xbb   :  { %4097 = vmatprep.mubr.msk.f32.mxu0 %vm280_vm0, %v110_v55 }
  0xbc   :  { %4296 = vmatmul.mubr.msk.f32.gmra.mxu1 %vm280_vm0, %v243_v60  ;;  %v258_v60 = vld [vmem:[%s5897_s0 + $0x770] sm:$0xff] }
  0xbd   :  { %4298 = vmatprep.mubr.msk.f32.mxu1 %vm280_vm0, %v244_v61 }
  0xbe   :  { %4098 = vmatmul.mubr.msk.f32.gmra.mxu0 %vm280_vm0, %v111_v58 }
  0xbf   :  { %4100 = vmatprep.mubr.msk.f32.mxu0 %vm280_vm0, %v112_v59 }
  0xc0   :  { %4299 = vmatmul.mubr.msk.f32.gmra.mxu1 %vm280_vm0, %v245_v0 }
  0xc1   :  { %4301 = vmatprep.mubr.msk.f32.mxu1 %vm280_vm0, %v246_v1  ;;  %v128_v1 = vld [vmem:[%s5897_s0 + $0x360] sm:$0xff] }
  0xc2   :  { %4101 = vmatmul.mubr.msk.f32.gmra.mxu0 %vm280_vm0, %v113_v62  ;;  %v127_v62 = vld [vmem:[%s5897_s0 + $0x358] sm:$0xff] }
  0xc3   :  { %4103 = vmatprep.mubr.msk.f32.mxu0 %vm280_vm0, %v114_v63 }
  0xc4   :  { %4302 = vmatmul.mubr.msk.f32.gmra.mxu1 %vm280_vm0, %v247_v4 }
  0xc5   :  { %4304 = vmatprep.mubr.msk.f32.mxu1 %vm280_vm0, %v248_v5 }
  0xc6   :  { %4104 = vmatmul.mubr.msk.f32.gmra.mxu0 %vm280_vm0, %v115_v2 }
  0xc7   :  { %4106 = vmatprep.mubr.msk.f32.mxu0 %vm280_vm0, %v116_v3 }
  0xc8   :  { %4305 = vmatmul.mubr.msk.f32.gmra.mxu1 %vm280_vm0, %v249_v8 }
  0xc9   :  { %4307 = vmatprep.mubr.msk.f32.mxu1 %vm280_vm0, %v250_v10  ;;  %v260_v10 = vld [vmem:[%s5897_s0 + $0x780] sm:$0xff] }
  0xca   :  { %v3964_v9 = vpop.f32.mrf.mxu0  ;;  %4107 = vmatmul.mubr.msk.f32.gmra.mxu0 %vm280_vm0, %v117_v6  ;;  %v259_v6 = vld [vmem:[%s5897_s0 + $0x778] sm:$0xff] }
  0xcb   :  { %v2395_v11 = vmax.f32 %v3964_v9, 0.0  ;;  %4109 = vmatprep.mubr.msk.f32.mxu0 %vm280_vm0, %v118_v7 }
  0xcc   :  { %v1115_v13 = vpop.f32.mrf.mxu0  ;;  %v5251_v25 = vpop.f32.mrf.mxu1  ;;  %4308 = vmatmul.mubr.msk.f32.gmra.mxu1 %vm280_vm0, %v251_v16  ;;  %v130_v16 = vld [vmem:[%s5897_s0 + $0x370] sm:$0xff] }
  0xcd   :  { %v2394_v15 = vmax.f32 %v1115_v13, 0.0  ;;  %v2652_v19 = vsel %vm2650_vm1, %v2395_v11, 0.0  ;;  %4310 = vmatprep.mubr.msk.f32.mxu1 %vm280_vm0, %v252_v18  ;;  %v3219_v11 = vld [vmem:[%s5898_s2 + $0x30] sm:$0xff]  ;;  %v129_v13 = vld [vmem:[%s5897_s0 + $0x368] sm:$0xff] }
  0xce   :  { %v3967_v17 = vpop.f32.mrf.mxu0  ;;  %4110 = vmatmul.mubr.msk.f32.gmra.mxu0 %vm280_vm0, %v119_v12  ;;  %v5259_v30 = vpop.f32.mrf.mxu1  ;;  %4349 = vmatpush3.msra.mxu1 %v3219_v11 }
  0xcf   :  { %v2651_v20 = vsel %vm2650_vm1, %v2394_v15, 0.0  ;;  %4112 = vmatprep.mubr.msk.f32.mxu0 %vm280_vm0, %v120_v14  ;;  %v2397_v26 = vmax.f32 %v3967_v17, 0.0  ;;  %4350 = vmatprep.subr.mxu1 %v4395_v47 }
  0xd0   :  { %v2653_v22 = vadd.f32 %v2652_v19, %v2651_v20  ;;  %v1125_v23 = vpop.f32.mrf.mxu0  ;;  %v5272_v37 = vpop.f32.mrf.mxu1  ;;  %4311 = vmatmul.mubr.msk.f32.gmra.mxu1 %vm280_vm0, %v253_v28  ;;  %v131_v28 = vld [vmem:[%s5897_s0 + $0x378] sm:$0xff] }
  0xd1   :  { %v2396_v27 = vmax.f32 %v1125_v23, 0.0  ;;  %v2656_v38 = vsel %vm2650_vm1, %v2397_v26, 0.0  ;;  %4313 = vmatprep.mubr.msk.f32.mxu1 %vm280_vm0, %v254_v31  ;;  %v262_v26 = vld [vmem:[%s5897_s0 + $0x790] sm:$0xff] }
  0xd2   :  { %v3970_v29 = vpop.f32.mrf.mxu0  ;;  %4113 = vmatmul.mubr.msk.f32.gmra.mxu0 %vm280_vm0, %v121_v21  ;;  %v5281_v44 = vpop.f32.mrf.mxu1  ;;  %v261_v21 = vld [vmem:[%s5897_s0 + $0x788] sm:$0xff] }
  0xd3   :  { %v2654_v32 = vsel %vm2650_vm1, %v2396_v27, 0.0  ;;  %4115 = vmatprep.mubr.msk.f32.mxu0 %vm280_vm0, %v122_v24  ;;  %v2399_v39 = vmax.f32 %v3970_v29, 0.0 }
  0xd4   :  { %v2655_v34 = vadd.f32 %v2654_v32, %v2653_v22  ;;  %v1135_v35 = vpop.f32.mrf.mxu0  ;;  %v5294_v52 = vpop.f32.mrf.mxu1  ;;  %4314 = vmatmul.mubr.msk.f32.gmra.mxu1 %vm280_vm0, %v255_v41  ;;  %v132_v32 = vld [vmem:[%s5897_s0 + $0x380] sm:$0xff] }
  0xd5   :  { %v2398_v40 = vmax.f32 %v1135_v35, 0.0  ;;  %v2660_v53 = vsel %vm2650_vm1, %v2399_v39, 0.0  ;;  %4316 = vmatprep.mubr.msk.f32.mxu1 %vm280_vm0, %v256_v45  ;;  %v133_v45 = vld [vmem:[%s5897_s0 + $0x388] sm:$0xff] }
  0xd6   :  { %v2657_v42 = vadd.f32 %v2656_v38, %v2655_v34  ;;  %v3973_v43 = vpop.f32.mrf.mxu0  ;;  %4116 = vmatmul.mubr.msk.f32.gmra.mxu0 %vm280_vm0, %v123_v33  ;;  %v5303_v59 = vpop.f32.mrf.mxu1  ;;  %v263_v38 = vld [vmem:[%s5897_s0 + $0x798] sm:$0xff] }
  0xd7   :  { %v2658_v46 = vsel %vm2650_vm1, %v2398_v40, 0.0  ;;  %4118 = vmatprep.mubr.msk.f32.mxu0 %vm280_vm0, %v124_v36  ;;  %v2401_v54 = vmax.f32 %v3973_v43, 0.0 }
  0xd8   :  { %v2659_v49 = vadd.f32 %v2658_v46, %v2657_v42  ;;  %v1145_v50 = vpop.f32.mrf.mxu0  ;;  %v5316_v2 = vpop.f32.mrf.mxu1  ;;  %4317 = vmatmul.mubr.msk.f32.gmra.mxu1 %vm280_vm0, %v257_v56  ;;  %v264_v42 = vld [vmem:[%s5897_s0 + $0x7a0] sm:$0xff] }
  0xd9   :  { %v2400_v55 = vmax.f32 %v1145_v50, 0.0  ;;  %v2664_v3 = vsel %vm2650_vm1, %v2401_v54, 0.0  ;;  %4319 = vmatprep.mubr.msk.f32.mxu1 %vm280_vm0, %v258_v60  ;;  %v266_v60 = vld [vmem:[%s5897_s0 + $0x7b0] sm:$0xff] }
  0xda   :  { %v2661_v57 = vadd.f32 %v2660_v53, %v2659_v49  ;;  %v3976_v58 = vpop.f32.mrf.mxu0  ;;  %4119 = vmatmul.mubr.msk.f32.gmra.mxu0 %vm280_vm0, %v125_v48  ;;  %v5325_v9 = vpop.f32.mrf.mxu1  ;;  %v134_v49 = vld [vmem:[%s5897_s0 + $0x390] sm:$0xff] }
  0xdb   :  { %v2662_v61 = vsel %vm2650_vm1, %v2400_v55, 0.0  ;;  %4121 = vmatprep.mubr.msk.f32.mxu0 %vm280_vm0, %v126_v51  ;;  %v2403_v4 = vmax.f32 %v3976_v58, 0.0  ;;  %v265_v55 = vld [vmem:[%s5897_s0 + $0x7a8] sm:$0xff] }
  0xdc   :  { %v2663_v63 = vadd.f32 %v2662_v61, %v2661_v57  ;;  %v1155_v0 = vpop.f32.mrf.mxu0  ;;  %v5341_v17 = vpop.f32.mrf.mxu1  ;;  %4320 = vmatmul.mubr.msk.f32.gmra.mxu1 %vm280_vm0, %v259_v6 }
  0xdd   :  { %v2402_v5 = vmax.f32 %v1155_v0, 0.0  ;;  %v2668_v18 = vsel %vm2650_vm1, %v2403_v4, 0.0  ;;  %4322 = vmatprep.mubr.msk.f32.mxu1 %vm280_vm0, %v260_v10 }
  0xde   :  { %v2665_v7 = vadd.f32 %v2664_v3, %v2663_v63  ;;  %v3979_v8 = vpop.f32.mrf.mxu0  ;;  %4122 = vmatmul.mubr.msk.f32.gmra.mxu0 %vm280_vm0, %v127_v62  ;;  %v5351_v24 = vpop.f32.mrf.mxu1  ;;  %v135_v62 = vld [vmem:[%s5897_s0 + $0x398] sm:$0xff] }
  0xdf   :  { %v2666_v12 = vsel %vm2650_vm1, %v2402_v5, 0.0  ;;  %4124 = vmatprep.mubr.msk.f32.mxu0 %vm280_vm0, %v128_v1  ;;  %v2405_v19 = vmax.f32 %v3979_v8, 0.0  ;;  %v136_v1 = vld [vmem:[%s5897_s0 + $0x3a0] sm:$0xff]  ;;  %v3218_v8 = vld [vmem:[%s5898_s2 + $0x28] sm:$0xff] }
  0xe0   :  { %v2667_v14 = vadd.f32 %v2666_v12, %v2665_v7  ;;  %v1165_v15 = vpop.f32.mrf.mxu0  ;;  %v5364_v33 = vpop.f32.mrf.mxu1  ;;  %4323 = vmatmul.mubr.msk.f32.gmra.mxu1 %vm280_vm0, %v261_v21  ;;  %v267_v7 = vld [vmem:[%s5897_s0 + $0x7b8] sm:$0xff] }
  0xe1   :  { %v2404_v20 = vmax.f32 %v1165_v15, 0.0  ;;  %v2672_v34 = vsel %vm2650_vm1, %v2405_v19, 0.0  ;;  %4325 = vmatprep.mubr.msk.f32.mxu1 %vm280_vm0, %v262_v26  ;;  %4351 = vmatpush3.msra.mxu1 %v3218_v8  ;;  %v137_v15 = vld [vmem:[%s5897_s0 + $0x3a8] sm:$0xff]  ;;  %v138_v19 = vld [vmem:[%s5897_s0 + $0x3b0] sm:$0xff]  ;;  %v143_v8 = vld [vmem:[%s5897_s0 + $0x3d8] sm:$0xff] }
  0xe2   :  { %v2669_v22 = vadd.f32 %v2668_v18, %v2667_v14  ;;  %v3982_v23 = vpop.f32.mrf.mxu0  ;;  %4125 = vmatmul.mubr.msk.f32.gmra.mxu0 %vm280_vm0, %v129_v13  ;;  %v5373_v41 = vpop.f32.mrf.mxu1  ;;  %v268_v13 = vld [vmem:[%s5897_s0 + $0x7c0] sm:$0xff]  ;;  %4352 = vmatprep.subr.mxu1 %v4395_v47  ;;  %v269_v26 = vld [vmem:[%s5897_s0 + $0x7c8] sm:$0xff] }
  0xe3   :  { %v2670_v27 = vsel %vm2650_vm1, %v2404_v20, 0.0  ;;  %4127 = vmatprep.mubr.msk.f32.mxu0 %vm280_vm0, %v130_v16  ;;  %v2407_v35 = vmax.f32 %v3982_v23, 0.0 }
  0xe4   :  { %v2671_v29 = vadd.f32 %v2670_v27, %v2669_v22  ;;  %v1175_v31 = vpop.f32.mrf.mxu0  ;;  %v5386_v50 = vpop.f32.mrf.mxu1  ;;  %4326 = vmatmul.mubr.msk.f32.gmra.mxu1 %vm280_vm0, %v263_v38  ;;  %v140_v38 = vld [vmem:[%s5897_s0 + $0x3c0] sm:$0xff] }
  0xe5   :  { %v2406_v36 = vmax.f32 %v1175_v31, 0.0  ;;  %v2676_v51 = vsel %vm2650_vm1, %v2407_v35, 0.0  ;;  %4328 = vmatprep.mubr.msk.f32.mxu1 %vm280_vm0, %v264_v42  ;;  %v270_v31 = vld [vmem:[%s5897_s0 + $0x7d0] sm:$0xff] }
  0xe6   :  { %v2673_v39 = vadd.f32 %v2672_v34, %v2671_v29  ;;  %v3985_v40 = vpop.f32.mrf.mxu0  ;;  %4128 = vmatmul.mubr.msk.f32.gmra.mxu0 %vm280_vm0, %v131_v28  ;;  %v5395_v58 = vpop.f32.mrf.mxu1  ;;  %v139_v34 = vld [vmem:[%s5897_s0 + $0x3b8] sm:$0xff] }
  0xe7   :  { %v2674_v43 = vsel %vm2650_vm1, %v2406_v36, 0.0  ;;  %4130 = vmatprep.mubr.msk.f32.mxu0 %vm280_vm0, %v132_v32  ;;  %v2409_v53 = vmax.f32 %v3985_v40, 0.0 }
  0xe8   :  { %v2675_v46 = vadd.f32 %v2674_v43, %v2673_v39  ;;  %v1185_v48 = vpop.f32.mrf.mxu0  ;;  %v5408_v3 = vpop.f32.mrf.mxu1  ;;  %4329 = vmatmul.mubr.msk.f32.gmra.mxu1 %vm280_vm0, %v265_v55 }
  0xe9   :  { %v2408_v54 = vmax.f32 %v1185_v48, 0.0  ;;  %v2680_v4 = vsel %vm2650_vm1, %v2409_v53, 0.0  ;;  %4331 = vmatprep.mubr.msk.f32.mxu1 %vm280_vm0, %v266_v60 }
  0xea   :  { %v2677_v56 = vadd.f32 %v2676_v51, %v2675_v46  ;;  %v3988_v57 = vpop.f32.mrf.mxu0  ;;  %4131 = vmatmul.mubr.msk.f32.gmra.mxu0 %vm280_vm0, %v133_v45  ;;  %v5420_v12 = vpop.f32.mrf.mxu1  ;;  %v271_v45 = vld [vmem:[%s5897_s0 + $0x7d8] sm:$0xff]  ;;  %v272_v51 = vld [vmem:[%s5897_s0 + $0x7e0] sm:$0xff] }
  0xeb   :  { %v2678_v61 = vsel %vm2650_vm1, %v2408_v54, 0.0  ;;  %4133 = vmatprep.mubr.msk.f32.mxu0 %vm280_vm0, %v134_v49  ;;  %v2411_v5 = vmax.f32 %v3988_v57, 0.0  ;;  %v141_v54 = vld [vmem:[%s5897_s0 + $0x3c8] sm:$0xff]  ;;  %v142_v57 = vld [vmem:[%s5897_s0 + $0x3d0] sm:$0xff] }
  0xec   :  { %v2679_v63 = vadd.f32 %v2678_v61, %v2677_v56  ;;  %v1195_v0 = vpop.f32.mrf.mxu0  ;;  %v5434_v20 = vpop.f32.mrf.mxu1  ;;  %4332 = vmatmul.mubr.msk.f32.gmra.mxu1 %vm280_vm0, %v267_v7 }
  0xed   :  { %v2410_v6 = vmax.f32 %v1195_v0, 0.0  ;;  %v2684_v21 = vsel %vm2650_vm1, %v2411_v5, 0.0  ;;  %4334 = vmatprep.mubr.msk.f32.mxu1 %vm280_vm0, %v268_v13  ;;  %v273_v0 = vld [vmem:[%s5897_s0 + $0x7e8] sm:$0xff]  ;;  %v144_v13 = vld [vmem:[%s5897_s0 + $0x3e0] sm:$0xff] }
  0xee   :  { %v2681_v10 = vadd.f32 %v2680_v4, %v2679_v63  ;;  %v3991_v11 = vpop.f32.mrf.mxu0  ;;  %4134 = vmatmul.mubr.msk.f32.gmra.mxu0 %vm280_vm0, %v135_v62  ;;  %v5443_v29 = vpop.f32.mrf.mxu1 }
  0xef   :  { %v2682_v14 = vsel %vm2650_vm1, %v2410_v6, 0.0  ;;  %4136 = vmatprep.mubr.msk.f32.mxu0 %vm280_vm0, %v136_v1  ;;  %v2413_v22 = vmax.f32 %v3991_v11, 0.0  ;;  %v274_v6 = vld [vmem:[%s5897_s0 + $0x7f0] sm:$0xff] }
  0xf0   :  { %v2683_v16 = vadd.f32 %v2682_v14, %v2681_v10  ;;  %v1205_v18 = vpop.f32.mrf.mxu0  ;;  %v5456_v39 = vpop.f32.mrf.mxu1  ;;  %4335 = vmatmul.mubr.msk.f32.gmra.mxu1 %vm280_vm0, %v269_v26 }
  0xf1   :  { %v2412_v23 = vmax.f32 %v1205_v18, 0.0  ;;  %v2688_v40 = vsel %vm2650_vm1, %v2413_v22, 0.0  ;;  %4337 = vmatprep.mubr.msk.f32.mxu1 %vm280_vm0, %v270_v31 }
  0xf2   :  { %v2685_v27 = vadd.f32 %v2684_v21, %v2683_v16  ;;  %v3994_v28 = vpop.f32.mrf.mxu0  ;;  %4137 = vmatmul.mubr.msk.f32.gmra.mxu0 %vm280_vm0, %v137_v15  ;;  %v5465_v49 = vpop.f32.mrf.mxu1 }
  0xf3   :  { %v2686_v32 = vsel %vm2650_vm1, %v2412_v23, 0.0  ;;  %4139 = vmatprep.mubr.msk.f32.mxu0 %vm280_vm0, %v138_v19  ;;  %v2415_v42 = vmax.f32 %v3994_v28, 0.0  ;;  %v275_v19 = vld [vmem:[%s5897_s0 + $0x7f8] sm:$0xff] }
  0xf4   :  { %v2687_v35 = vadd.f32 %v2686_v32, %v2685_v27  ;;  %v1215_v36 = vpop.f32.mrf.mxu0  ;;  %v5478_v60 = vpop.f32.mrf.mxu1  ;;  %4338 = vmatmul.mubr.msk.f32.gmra.mxu1 %vm280_vm0, %v271_v45  ;;  %v145_v27 = vld [vmem:[%s5897_s0 + $0x3e8] sm:$0xff]  ;;  %v146_v32 = vld [vmem:[%s5897_s0 + $0x3f0] sm:$0xff] }
  0xf5   :  { %v2414_v43 = vmax.f32 %v1215_v36, 0.0  ;;  %v2692_v61 = vsel %vm2650_vm1, %v2415_v42, 0.0  ;;  %4340 = vmatprep.mubr.msk.f32.mxu1 %vm280_vm0, %v272_v51 }
  0xf6   :  { %v2689_v46 = vadd.f32 %v2688_v40, %v2687_v35  ;;  %v3997_v48 = vpop.f32.mrf.mxu0  ;;  %4140 = vmatmul.mubr.msk.f32.gmra.mxu0 %vm280_vm0, %v139_v34  ;;  %v5487_v5 = vpop.f32.mrf.mxu1 }
  0xf7   :  { %v2690_v53 = vsel %vm2650_vm1, %v2414_v43, 0.0  ;;  %4142 = vmatprep.mubr.msk.f32.mxu0 %vm280_vm0, %v140_v38  ;;  %v2417_v62 = vmax.f32 %v3997_v48, 0.0 }
  0xf8   :  { %v2691_v55 = vadd.f32 %v2690_v53, %v2689_v46  ;;  %v1225_v56 = vpop.f32.mrf.mxu0  ;;  %v5500_v14 = vpop.f32.mrf.mxu1  ;;  %4341 = vmatmul.mubr.msk.f32.gmra.mxu1 %vm280_vm0, %v273_v0  ;;  %v147_v46 = vld [vmem:[%s5897_s0 + $0x3f8] sm:$0xff]  ;;  %v148_v53 = vld [vmem:[%s5897_s0 + $0x400] sm:$0xff] }
  0xf9   :  { %v2416_v63 = vmax.f32 %v1225_v56, 0.0  ;;  %v2696_v15 = vsel %vm2650_vm1, %v2417_v62, 0.0  ;;  %4343 = vmatprep.mubr.msk.f32.mxu1 %vm280_vm0, %v274_v6 }
  0xfa   :  { %v2693_v1 = vadd.f32 %v2692_v61, %v2691_v55  ;;  %v4000_v4 = vpop.f32.mrf.mxu0  ;;  %4143 = vmatmul.mubr.msk.f32.gmra.mxu0 %vm280_vm0, %v141_v54  ;;  %v5509_v23 = vpop.f32.mrf.mxu1 }
  0xfb   :  { %v2694_v7 = vsel %vm2650_vm1, %v2416_v63, 0.0  ;;  %4145 = vmatprep.mubr.msk.f32.mxu0 %vm280_vm0, %v142_v57  ;;  %v2419_v16 = vmax.f32 %v4000_v4, 0.0  ;;  %v149_v4 = vld [vmem:[%s5897_s0 + $0x408] sm:$0xff] }
  0xfc   :  { %v2695_v10 = vadd.f32 %v2694_v7, %v2693_v1  ;;  %v1235_v11 = vpop.f32.mrf.mxu0  ;;  %v5519_v34 = vpop.f32.mrf.mxu1  ;;  %4344 = vmatmul.mubr.msk.f32.gmra.mxu1 %vm280_vm0, %v275_v19 }
  0xfd   :  { %v2418_v18 = vmax.f32 %v1235_v11, 0.0  ;;  %v2700_v35 = vsel %vm2650_vm1, %v2419_v16, 0.0  ;;  %4362 = vmatprep.mubr.msk.f32.mxu1 %vm4396_vm3, %v4395_v47 }
  0xfe   :  { %v2697_v21 = vadd.f32 %v2696_v15, %v2695_v10  ;;  %v4003_v22 = vpop.f32.mrf.mxu0  ;;  %4146 = vmatmul.mubr.msk.f32.gmra.mxu0 %vm280_vm0, %v143_v8  ;;  %v5524_v43 = vpop.f32.mrf.mxu1 }
  0xff   :  { %v2698_v26 = vsel %vm2650_vm1, %v2418_v18, 0.0  ;;  %4148 = vmatprep.mubr.msk.f32.mxu0 %vm280_vm0, %v144_v13  ;;  %v2421_v36 = vmax.f32 %v4003_v22, 0.0  ;;  %v150_v13 = vld [vmem:[%s5897_s0 + $0x410] sm:$0xff] }
 0x100   :  { %v2699_v28 = vadd.f32 %v2698_v26, %v2697_v21  ;;  %v1245_v31 = vpop.f32.mrf.mxu0  ;;  %v4204_v54 = vpop.f32.mrf.mxu1 }
 0x101   :  { %v2420_v38 = vmax.f32 %v1245_v31, 0.0  ;;  %v2704_v55 = vsel %vm2650_vm1, %v2421_v36, 0.0  ;;  %v2555_v61 = vmax.f32 %v4204_v54, 0.0 }
 0x102   :  { %v2701_v40 = vadd.f32 %v2700_v35, %v2699_v28  ;;  %v4006_v42 = vpop.f32.mrf.mxu0  ;;  %4149 = vmatmul.mubr.msk.f32.gmra.mxu0 %vm280_vm0, %v145_v27  ;;  %v1915_v0 = vpop.f32.mrf.mxu1  ;;  %v151_v35 = vld [vmem:[%s5897_s0 + $0x418] sm:$0xff] }
 0x103   :  { %v2702_v45 = vsel %vm2650_vm1, %v2420_v38, 0.0  ;;  %4151 = vmatprep.mubr.msk.f32.mxu0 %vm280_vm0, %v146_v32  ;;  %v2423_v56 = vmax.f32 %v4006_v42, 0.0  ;;  %v2997_v6 = vsel %vm2650_vm1, %v2555_v61, 0.0  ;;  %v2554_v7 = vmax.f32 %v1915_v0, 0.0  ;;  %v153_v0 = vld [vmem:[%s5897_s0 + $0x428] sm:$0xff] }
 0x104   :  { %v2703_v48 = vadd.f32 %v2702_v45, %v2701_v40  ;;  %v1255_v51 = vpop.f32.mrf.mxu0  ;;  %v4207_v15 = vpop.f32.mrf.mxu1  ;;  %v152_v45 = vld [vmem:[%s5897_s0 + $0x420] sm:$0xff] }
 0x105   :  { %v2422_v57 = vmax.f32 %v1255_v51, 0.0  ;;  %v2708_v16 = vsel %vm2650_vm1, %v2423_v56, 0.0  ;;  %v2996_v19 = vsel %vm2650_vm1, %v2554_v7, 0.0  ;;  %v2557_v21 = vmax.f32 %v4207_v15, 0.0 }
 0x106   :  { %v2705_v62 = vadd.f32 %v2704_v55, %v2703_v48  ;;  %v4009_v63 = vpop.f32.mrf.mxu0  ;;  %4152 = vmatmul.mubr.msk.f32.gmra.mxu0 %vm280_vm0, %v147_v46  ;;  %v2998_v27 = vadd.f32 %v2997_v6, %v2996_v19  ;;  %v1925_v28 = vpop.f32.mrf.mxu1 }
 0x107   :  { %v2706_v1 = vsel %vm2650_vm1, %v2422_v57, 0.0  ;;  %4154 = vmatprep.mubr.msk.f32.mxu0 %vm280_vm0, %v148_v53  ;;  %v2425_v10 = vmax.f32 %v4009_v63, 0.0  ;;  %v2556_v36 = vmax.f32 %v1925_v28, 0.0  ;;  %v3001_v51 = vsel %vm2650_vm1, %v2557_v21, 0.0 }
 0x108   :  { %v2707_v8 = vadd.f32 %v2706_v1, %v2705_v62  ;;  %v1265_v11 = vpop.f32.mrf.mxu0  ;;  %v4210_v46 = vpop.f32.mrf.mxu1 }
 0x109   :  { %v2424_v18 = vmax.f32 %v1265_v11, 0.0  ;;  %v2712_v38 = vsel %vm2650_vm1, %v2425_v10, 0.0  ;;  %v2999_v53 = vsel %vm2650_vm1, %v2556_v36, 0.0  ;;  %v2559_v54 = vmax.f32 %v4210_v46, 0.0 }
 0x10a   :  { %v2709_v22 = vadd.f32 %v2708_v16, %v2707_v8  ;;  %v4012_v26 = vpop.f32.mrf.mxu0  ;;  %4155 = vmatmul.mubr.msk.f32.gmra.mxu0 %vm280_vm0, %v149_v4  ;;  %v3000_v57 = vadd.f32 %v2999_v53, %v2998_v27  ;;  %v1935_v61 = vpop.f32.mrf.mxu1 }
 0x10b   :  { %v2710_v31 = vsel %vm2650_vm1, %v2424_v18, 0.0  ;;  %v2427_v32 = vmax.f32 %v4012_v26, 0.0  ;;  %4157 = vmatprep.mubr.msk.f32.mxu0 %vm280_vm0, %v150_v13  ;;  %v2558_v1 = vmax.f32 %v1935_v61, 0.0  ;;  %v3005_v13 = vsel %vm2650_vm1, %v2559_v54, 0.0 }
 0x10c   :  { %v2711_v40 = vadd.f32 %v2710_v31, %v2709_v22  ;;  %v1275_v42 = vpop.f32.mrf.mxu0  ;;  %v3002_v8 = vadd.f32 %v3001_v51, %v3000_v57  ;;  %v4213_v10 = vpop.f32.mrf.mxu1 }
 0x10d   :  { %v2426_v48 = vmax.f32 %v1275_v42, 0.0  ;;  %v2721_v62 = vsel %vm2650_vm1, %v2427_v32, 0.0  ;;  %v3003_v15 = vsel %vm2650_vm1, %v2558_v1, 0.0  ;;  %v2561_v16 = vmax.f32 %v4213_v10, 0.0 }
 0x10e   :  { %v5559_v55 = vadd.f32 %v2712_v38, %v2711_v40  ;;  %v4015_v56 = vpop.f32.mrf.mxu0  ;;  %4158 = vmatmul.mubr.msk.f32.gmra.mxu0 %vm280_vm0, %v151_v35  ;;  %v3004_v19 = vadd.f32 %v3003_v15, %v3002_v8  ;;  %v1945_v21 = vpop.f32.mrf.mxu1 }
 0x10f   :  { %v2720_v63 = vsel %vm2650_vm1, %v2426_v48, 0.0  ;;  %4160 = vmatprep.mubr.msk.f32.mxu0 %vm280_vm0, %v152_v45  ;;  %v2429_v6 = vmax.f32 %v4015_v56, 0.0  ;;  %v2560_v26 = vmax.f32 %v1945_v21, 0.0  ;;  %v3009_v40 = vsel %vm2650_vm1, %v2561_v16, 0.0 }
 0x110   :  { %v2722_v4 = vadd.f32 %v2721_v62, %v2720_v63  ;;  %v1285_v7 = vpop.f32.mrf.mxu0  ;;  %v3006_v35 = vadd.f32 %v3005_v13, %v3004_v19  ;;  %v4216_v36 = vpop.f32.mrf.mxu1 }
 0x111   :  { %v2428_v11 = vmax.f32 %v1285_v7, 0.0  ;;  %v2725_v27 = vsel %vm2650_vm1, %v2429_v6, 0.0  ;;  %v3007_v42 = vsel %vm2650_vm1, %v2560_v26, 0.0  ;;  %v2563_v45 = vmax.f32 %v4216_v36, 0.0 }
 0x112   :  { %v4018_v18 = vpop.f32.mrf.mxu0  ;;  %4161 = vmatmul.mubr.msk.f32.gmra.mxu0 %vm280_vm0, %v153_v0  ;;  %v3008_v51 = vadd.f32 %v3007_v42, %v3006_v35  ;;  %v1955_v53 = vpop.f32.mrf.mxu1 }
 0x113   :  { %v2723_v22 = vsel %vm2650_vm1, %v2428_v11, 0.0  ;;  %v2431_v31 = vmax.f32 %v4018_v18, 0.0  ;;  %v2562_v56 = vmax.f32 %v1955_v53, 0.0  ;;  %v3013_v6 = vsel %vm2650_vm1, %v2563_v45, 0.0 }
 0x114   :  { %v2724_v28 = vadd.f32 %v2723_v22, %v2722_v4  ;;  %v1295_v32 = vpop.f32.mrf.mxu0  ;;  %v3010_v0 = vadd.f32 %v3009_v40, %v3008_v51  ;;  %v4219_v1 = vpop.f32.mrf.mxu1 }
 0x115   :  { %v2430_v38 = vmax.f32 %v1295_v32, 0.0  ;;  %v2729_v57 = vsel %vm2650_vm1, %v2431_v31, 0.0  ;;  %v3011_v7 = vsel %vm2650_vm1, %v2562_v56, 0.0  ;;  %v2565_v8 = vmax.f32 %v4219_v1, 0.0 }
 0x116   :  { %v2726_v46 = vadd.f32 %v2725_v27, %v2724_v28  ;;  %v4021_v48 = vpop.f32.mrf.mxu0  ;;  %v3012_v13 = vadd.f32 %v3011_v7, %v3010_v0  ;;  %v1965_v15 = vpop.f32.mrf.mxu1 }
 0x117   :  { %v2727_v54 = vsel %vm2650_vm1, %v2430_v38, 0.0  ;;  %v2433_v62 = vmax.f32 %v4021_v48, 0.0  ;;  %v2564_v18 = vmax.f32 %v1965_v15, 0.0  ;;  %v3017_v32 = vsel %vm2650_vm1, %v2565_v8, 0.0 }
 0x118   :  { %v2728_v61 = vadd.f32 %v2727_v54, %v2726_v46  ;;  %v1305_v63 = vpop.f32.mrf.mxu0  ;;  %v3014_v27 = vadd.f32 %v3013_v6, %v3012_v13  ;;  %v4222_v28 = vpop.f32.mrf.mxu1  ;;  %v3217_v46 = vld [vmem:[%s5898_s2 + $0x20] sm:$0xff] }
 0x119   :  { %v2432_v4 = vmax.f32 %v1305_v63, 0.0  ;;  %v2733_v19 = vsel %vm2650_vm1, %v2433_v62, 0.0  ;;  %v3015_v35 = vsel %vm2650_vm1, %v2564_v18, 0.0  ;;  %v2567_v36 = vmax.f32 %v4222_v28, 0.0  ;;  %4353 = vmatpush3.msra.mxu1 %v3217_v46 }
 0x11a   :  { %v2730_v10 = vadd.f32 %v2729_v57, %v2728_v61  ;;  %v4024_v11 = vpop.f32.mrf.mxu0  ;;  %v3016_v42 = vadd.f32 %v3015_v35, %v3014_v27  ;;  %v1975_v45 = vpop.f32.mrf.mxu1  ;;  %4354 = vmatprep.subr.mxu1 %v4395_v47 }
 0x11b   :  { %v2731_v16 = vsel %vm2650_vm1, %v2432_v4, 0.0  ;;  %v2435_v22 = vmax.f32 %v4024_v11, 0.0  ;;  %v2566_v51 = vmax.f32 %v1975_v45, 0.0  ;;  %v3021_v0 = vsel %vm2650_vm1, %v2567_v36, 0.0 }
 0x11c   :  { %v2732_v21 = vadd.f32 %v2731_v16, %v2730_v10  ;;  %v1315_v26 = vpop.f32.mrf.mxu0  ;;  %v3018_v61 = vadd.f32 %v3017_v32, %v3016_v42  ;;  %v4225_v62 = vpop.f32.mrf.mxu1 }
 0x11d   :  { %v2434_v31 = vmax.f32 %v1315_v26, 0.0  ;;  %v2737_v53 = vsel %vm2650_vm1, %v2435_v22, 0.0  ;;  %v3019_v1 = vsel %vm2650_vm1, %v2566_v51, 0.0  ;;  %v2569_v4 = vmax.f32 %v4225_v62, 0.0 }
 0x11e   :  { %v2734_v38 = vadd.f32 %v2733_v19, %v2732_v21  ;;  %v4027_v40 = vpop.f32.mrf.mxu0  ;;  %v3020_v8 = vadd.f32 %v3019_v1, %v3018_v61  ;;  %v1985_v10 = vpop.f32.mrf.mxu1 }
 0x11f   :  { %v2735_v48 = vsel %vm2650_vm1, %v2434_v31, 0.0  ;;  %v2437_v56 = vmax.f32 %v4027_v40, 0.0  ;;  %v2568_v13 = vmax.f32 %v1985_v10, 0.0  ;;  %v3025_v27 = vsel %vm2650_vm1, %v2569_v4, 0.0 }
 0x120   :  { %v2736_v54 = vadd.f32 %v2735_v48, %v2734_v38  ;;  %v1325_v57 = vpop.f32.mrf.mxu0  ;;  %v3022_v21 = vadd.f32 %v3021_v0, %v3020_v8  ;;  %v4228_v22 = vpop.f32.mrf.mxu1 }
 0x121   :  { %v2436_v63 = vmax.f32 %v1325_v57, 0.0  ;;  %v2741_v15 = vsel %vm2650_vm1, %v2437_v56, 0.0  ;;  %v3023_v28 = vsel %vm2650_vm1, %v2568_v13, 0.0  ;;  %v2571_v31 = vmax.f32 %v4228_v22, 0.0 }
 0x122   :  { %v2738_v6 = vadd.f32 %v2737_v53, %v2736_v54  ;;  %v4030_v7 = vpop.f32.mrf.mxu0  ;;  %v3024_v36 = vadd.f32 %v3023_v28, %v3022_v21  ;;  %v1995_v38 = vpop.f32.mrf.mxu1 }
 0x123   :  { %v2739_v11 = vsel %vm2650_vm1, %v2436_v63, 0.0  ;;  %v2439_v18 = vmax.f32 %v4030_v7, 0.0  ;;  %v2570_v42 = vmax.f32 %v1995_v38, 0.0  ;;  %v3029_v57 = vsel %vm2650_vm1, %v2571_v31, 0.0 }
 0x124   :  { %v2740_v16 = vadd.f32 %v2739_v11, %v2738_v6  ;;  %v1335_v19 = vpop.f32.mrf.mxu0  ;;  %v3026_v53 = vadd.f32 %v3025_v27, %v3024_v36  ;;  %v4231_v54 = vpop.f32.mrf.mxu1 }
 0x125   :  { %v2438_v26 = vmax.f32 %v1335_v19, 0.0  ;;  %v2745_v45 = vsel %vm2650_vm1, %v2439_v18, 0.0  ;;  %v3027_v61 = vsel %vm2650_vm1, %v2570_v42, 0.0  ;;  %v2573_v62 = vmax.f32 %v4231_v54, 0.0  ;;  %v3216_v18 = vld [vmem:[%s5898_s2 + $0x18] sm:$0xff] }
 0x126   :  { %v2742_v32 = vadd.f32 %v2741_v15, %v2740_v16  ;;  %v4033_v35 = vpop.f32.mrf.mxu0  ;;  %v3028_v1 = vadd.f32 %v3027_v61, %v3026_v53  ;;  %v2005_v4 = vpop.f32.mrf.mxu1  ;;  %4355 = vmatpush3.msra.mxu1 %v3216_v18 }
 0x127   :  { %v2743_v40 = vsel %vm2650_vm1, %v2438_v26, 0.0  ;;  %v2441_v48 = vmax.f32 %v4033_v35, 0.0  ;;  %v2572_v7 = vmax.f32 %v2005_v4, 0.0  ;;  %v3033_v21 = vsel %vm2650_vm1, %v2573_v62, 0.0  ;;  %4356 = vmatprep.subr.mxu1 %v4395_v47 }
 0x128   :  { %v2744_v46 = vadd.f32 %v2743_v40, %v2742_v32  ;;  %v1345_v51 = vpop.f32.mrf.mxu0  ;;  %v3030_v15 = vadd.f32 %v3029_v57, %v3028_v1  ;;  %v4234_v16 = vpop.f32.mrf.mxu1 }
 0x129   :  { %v2440_v56 = vmax.f32 %v1345_v51, 0.0  ;;  %v2749_v8 = vsel %vm2650_vm1, %v2441_v48, 0.0  ;;  %v3031_v22 = vsel %vm2650_vm1, %v2572_v7, 0.0  ;;  %v2575_v26 = vmax.f32 %v4234_v16, 0.0 }
 0x12a   :  { %v2746_v63 = vadd.f32 %v2745_v45, %v2744_v46  ;;  %v4036_v0 = vpop.f32.mrf.mxu0  ;;  %v3032_v31 = vadd.f32 %v3031_v22, %v3030_v15  ;;  %v2015_v32 = vpop.f32.mrf.mxu1 }
 0x12b   :  { %v2747_v6 = vsel %vm2650_vm1, %v2440_v56, 0.0  ;;  %v2443_v11 = vmax.f32 %v4036_v0, 0.0  ;;  %v2574_v36 = vmax.f32 %v2015_v32, 0.0  ;;  %v3037_v53 = vsel %vm2650_vm1, %v2575_v26, 0.0 }
 0x12c   :  { %v2748_v10 = vadd.f32 %v2747_v6, %v2746_v63  ;;  %v1355_v13 = vpop.f32.mrf.mxu0  ;;  %v3034_v46 = vadd.f32 %v3033_v21, %v3032_v31  ;;  %v4237_v48 = vpop.f32.mrf.mxu1 }
 0x12d   :  { %v2442_v19 = vmax.f32 %v1355_v13, 0.0  ;;  %v2753_v38 = vsel %vm2650_vm1, %v2443_v11, 0.0  ;;  %v3035_v54 = vsel %vm2650_vm1, %v2574_v36, 0.0  ;;  %v2577_v56 = vmax.f32 %v4237_v48, 0.0 }
 0x12e   :  { %v2750_v27 = vadd.f32 %v2749_v8, %v2748_v10  ;;  %v4039_v28 = vpop.f32.mrf.mxu0  ;;  %v3036_v62 = vadd.f32 %v3035_v54, %v3034_v46  ;;  %v2025_v63 = vpop.f32.mrf.mxu1 }
 0x12f   :  { %v2751_v35 = vsel %vm2650_vm1, %v2442_v19, 0.0  ;;  %v2445_v42 = vmax.f32 %v4039_v28, 0.0  ;;  %v2576_v1 = vmax.f32 %v2025_v63, 0.0  ;;  %v3041_v15 = vsel %vm2650_vm1, %v2577_v56, 0.0 }
 0x130   :  { %v2752_v40 = vadd.f32 %v2751_v35, %v2750_v27  ;;  %v1365_v45 = vpop.f32.mrf.mxu0  ;;  %v3038_v10 = vadd.f32 %v3037_v53, %v3036_v62  ;;  %v4240_v11 = vpop.f32.mrf.mxu1 }
 0x131   :  { %v2444_v51 = vmax.f32 %v1365_v45, 0.0  ;;  %v2757_v4 = vsel %vm2650_vm1, %v2445_v42, 0.0  ;;  %v3039_v16 = vsel %vm2650_vm1, %v2576_v1, 0.0  ;;  %v2579_v18 = vmax.f32 %v4240_v11, 0.0 }
 0x132   :  { %v2754_v57 = vadd.f32 %v2753_v38, %v2752_v40  ;;  %v4042_v61 = vpop.f32.mrf.mxu0  ;;  %v3040_v22 = vadd.f32 %v3039_v16, %v3038_v10  ;;  %v2035_v26 = vpop.f32.mrf.mxu1 }
 0x133   :  { %v2755_v0 = vsel %vm2650_vm1, %v2444_v51, 0.0  ;;  %v2447_v7 = vmax.f32 %v4042_v61, 0.0  ;;  %v2578_v28 = vmax.f32 %v2035_v26, 0.0  ;;  %v3045_v45 = vsel %vm2650_vm1, %v2579_v18, 0.0 }
 0x134   :  { %v2756_v6 = vadd.f32 %v2755_v0, %v2754_v57  ;;  %v1375_v8 = vpop.f32.mrf.mxu0  ;;  %v3042_v38 = vadd.f32 %v3041_v15, %v3040_v22  ;;  %v4243_v40 = vpop.f32.mrf.mxu1 }
 0x135   :  { %v2446_v13 = vmax.f32 %v1375_v8, 0.0  ;;  %v2761_v31 = vsel %vm2650_vm1, %v2447_v7, 0.0  ;;  %v3043_v46 = vsel %vm2650_vm1, %v2578_v28, 0.0  ;;  %v2581_v48 = vmax.f32 %v4243_v40, 0.0 }
 0x136   :  { %v2758_v19 = vadd.f32 %v2757_v4, %v2756_v6  ;;  %v4045_v21 = vpop.f32.mrf.mxu0  ;;  %v3044_v54 = vadd.f32 %v3043_v46, %v3042_v38  ;;  %v2045_v56 = vpop.f32.mrf.mxu1 }
 0x137   :  { %v2759_v27 = vsel %vm2650_vm1, %v2446_v13, 0.0  ;;  %v2449_v35 = vmax.f32 %v4045_v21, 0.0  ;;  %v2580_v61 = vmax.f32 %v2045_v56, 0.0  ;;  %v3049_v8 = vsel %vm2650_vm1, %v2581_v48, 0.0 }
 0x138   :  { %v2760_v32 = vadd.f32 %v2759_v27, %v2758_v19  ;;  %v1385_v36 = vpop.f32.mrf.mxu0  ;;  %v3046_v4 = vadd.f32 %v3045_v45, %v3044_v54  ;;  %v4246_v6 = vpop.f32.mrf.mxu1 }
 0x139   :  { %v2448_v42 = vmax.f32 %v1385_v36, 0.0  ;;  %v2765_v62 = vsel %vm2650_vm1, %v2449_v35, 0.0  ;;  %v3047_v10 = vsel %vm2650_vm1, %v2580_v61, 0.0  ;;  %v2583_v11 = vmax.f32 %v4246_v6, 0.0 }
 0x13a   :  { %v2762_v51 = vadd.f32 %v2761_v31, %v2760_v32  ;;  %v4048_v53 = vpop.f32.mrf.mxu0  ;;  %v3048_v16 = vadd.f32 %v3047_v10, %v3046_v4  ;;  %v2055_v18 = vpop.f32.mrf.mxu1 }
 0x13b   :  { %v2763_v57 = vsel %vm2650_vm1, %v2448_v42, 0.0  ;;  %v2451_v0 = vmax.f32 %v4048_v53, 0.0  ;;  %v2582_v21 = vmax.f32 %v2055_v18, 0.0  ;;  %v3053_v36 = vsel %vm2650_vm1, %v2583_v11, 0.0 }
 0x13c   :  { %v2764_v63 = vadd.f32 %v2763_v57, %v2762_v51  ;;  %v1395_v1 = vpop.f32.mrf.mxu0  ;;  %v3050_v31 = vadd.f32 %v3049_v8, %v3048_v16  ;;  %v4249_v32 = vpop.f32.mrf.mxu1  ;;  %v2714_v42 = vrot.slane %v5559_v55, 4 }
 0x13d   :  { %v2450_v7 = vmax.f32 %v1395_v1, 0.0  ;;  %v2769_v22 = vsel %vm2650_vm1, %v2451_v0, 0.0  ;;  %v3051_v38 = vsel %vm2650_vm1, %v2582_v21, 0.0  ;;  %v2585_v40 = vmax.f32 %v4249_v32, 0.0 }
 0x13e   :  { %v2766_v13 = vadd.f32 %v2765_v62, %v2764_v63  ;;  %v4051_v15 = vpop.f32.mrf.mxu0  ;;  %v3052_v48 = vadd.f32 %v3051_v38, %v3050_v31  ;;  %v2065_v51 = vpop.f32.mrf.mxu1  ;;  %v2715_v8 = vadd.f32 %v2714_v42, %v5559_v55 }
 0x13f   :  { %v2767_v19 = vsel %vm2650_vm1, %v2450_v7, 0.0  ;;  %v2453_v27 = vmax.f32 %v4051_v15, 0.0  ;;  %v2584_v54 = vmax.f32 %v2065_v51, 0.0  ;;  %v3057_v4 = vsel %vm2650_vm1, %v2585_v40, 0.0 }
 0x140   :  { %v2768_v26 = vadd.f32 %v2767_v19, %v2766_v13  ;;  %v1405_v28 = vpop.f32.mrf.mxu0  ;;  %v3054_v63 = vadd.f32 %v3053_v36, %v3052_v48  ;;  %v4252_v0 = vpop.f32.mrf.mxu1  ;;  %v3215_v36 = vld [vmem:[%s5898_s2 + $0x10] sm:$0xff]  ;;  %v2716_v38 = vrot.slane %v2715_v8, 2 }
 0x141   :  { %v2452_v35 = vmax.f32 %v1405_v28, 0.0  ;;  %v2773_v56 = vsel %vm2650_vm1, %v2453_v27, 0.0  ;;  %v3055_v6 = vsel %vm2650_vm1, %v2584_v54, 0.0  ;;  %v2587_v7 = vmax.f32 %v4252_v0, 0.0  ;;  %4357 = vmatpush3.msra.mxu1 %v3215_v36 }
 0x142   :  { %v2770_v45 = vadd.f32 %v2769_v22, %v2768_v26  ;;  %v4054_v46 = vpop.f32.mrf.mxu0  ;;  %v3056_v13 = vadd.f32 %v3055_v6, %v3054_v63  ;;  %v2075_v15 = vpop.f32.mrf.mxu1  ;;  %4358 = vmatprep.subr.mxu1 %v4395_v47 }
 0x143   :  { %v2771_v53 = vsel %vm2650_vm1, %v2452_v35, 0.0  ;;  %v2455_v61 = vmax.f32 %v4054_v46, 0.0  ;;  %v3066_v18 = vsel %vm2650_vm1, %v2587_v7, 0.0  ;;  %v2586_v19 = vmax.f32 %v2075_v15, 0.0 }
 0x144   :  { %v2772_v57 = vadd.f32 %v2771_v53, %v2770_v45  ;;  %v1415_v62 = vpop.f32.mrf.mxu0  ;;  %v5635_v27 = vadd.f32 %v3057_v4, %v3056_v13  ;;  %v4255_v28 = vpop.f32.mrf.mxu1  ;;  %v2717_v4 = vadd.f32 %v2716_v38, %v2715_v8 }
 0x145   :  { %v2454_v1 = vmax.f32 %v1415_v62, 0.0  ;;  %v2777_v31 = vsel %vm2650_vm1, %v2455_v61, 0.0  ;;  %v3065_v55 = vsel %vm2650_vm1, %v2586_v19, 0.0  ;;  %v2589_v35 = vmax.f32 %v4255_v28, 0.0 }
 0x146   :  { %v2774_v10 = vadd.f32 %v2773_v56, %v2772_v57  ;;  %v4057_v11 = vpop.f32.mrf.mxu0  ;;  %v3067_v45 = vadd.f32 %v3066_v18, %v3065_v55  ;;  %v2085_v46 = vpop.f32.mrf.mxu1 }
 0x147   :  { %v2775_v16 = vsel %vm2650_vm1, %v2454_v1, 0.0  ;;  %v2457_v22 = vmax.f32 %v4057_v11, 0.0  ;;  %v2588_v53 = vmax.f32 %v2085_v46, 0.0  ;;  %v3070_v63 = vsel %vm2650_vm1, %v2589_v35, 0.0 }
 0x148   :  { %v2776_v21 = vadd.f32 %v2775_v16, %v2774_v10  ;;  %v1425_v26 = vpop.f32.mrf.mxu0  ;;  %v4258_v61 = vpop.f32.mrf.mxu1 }
 0x149   :  { %v2456_v32 = vmax.f32 %v1425_v26, 0.0  ;;  %v2781_v54 = vsel %vm2650_vm1, %v2457_v22, 0.0  ;;  %v3068_v0 = vsel %vm2650_vm1, %v2588_v53, 0.0  ;;  %v2591_v1 = vmax.f32 %v4258_v61, 0.0 }
 0x14a   :  { %v2778_v40 = vadd.f32 %v2777_v31, %v2776_v21  ;;  %v4060_v42 = vpop.f32.mrf.mxu0  ;;  %v3069_v10 = vadd.f32 %v3068_v0, %v3067_v45  ;;  %v2095_v11 = vpop.f32.mrf.mxu1 }
 0x14b   :  { %v2779_v48 = vsel %vm2650_vm1, %v2456_v32, 0.0  ;;  %v2459_v51 = vmax.f32 %v4060_v42, 0.0  ;;  %v2590_v18 = vmax.f32 %v2095_v11, 0.0  ;;  %v3074_v32 = vsel %vm2650_vm1, %v2591_v1, 0.0 }
 0x14c   :  { %v2780_v56 = vadd.f32 %v2779_v48, %v2778_v40  ;;  %v1435_v57 = vpop.f32.mrf.mxu0  ;;  %v3071_v26 = vadd.f32 %v3070_v63, %v3069_v10  ;;  %v4261_v28 = vpop.f32.mrf.mxu1  ;;  %v2718_v42 = vrot.slane %v2717_v4, 1 }
 0x14d   :  { %v2458_v62 = vmax.f32 %v1435_v57, 0.0  ;;  %v2790_v13 = vsel %vm2650_vm1, %v2459_v51, 0.0  ;;  %v3072_v8 = vsel %vm2650_vm1, %v2590_v18, 0.0  ;;  %v2593_v55 = vmax.f32 %v4261_v28, 0.0 }
 0x14e   :  { %v2782_v6 = vadd.f32 %v2781_v54, %v2780_v56  ;;  %v4063_v7 = vpop.f32.mrf.mxu0  ;;  %v3073_v38 = vadd.f32 %v3072_v8, %v3071_v26  ;;  %v2105_v40 = vpop.f32.mrf.mxu1 }
 0x14f   :  { %v2789_v15 = vsel %vm2650_vm1, %v2458_v62, 0.0  ;;  %v2461_v16 = vmax.f32 %v4063_v7, 0.0  ;;  %v2592_v48 = vmax.f32 %v2105_v40, 0.0  ;;  %v3078_v63 = vsel %vm2650_vm1, %v2593_v55, 0.0 }
 0x150   :  { %v2783_v19 = vrot.slane %v2782_v6, 4  ;;  %v2791_v21 = vadd.f32 %v2790_v13, %v2789_v15  ;;  %v1445_v22 = vpop.f32.mrf.mxu0  ;;  %v3075_v57 = vadd.f32 %v3074_v32, %v3073_v38  ;;  %v4264_v61 = vpop.f32.mrf.mxu1  ;;  %v2719_v15 = vadd.f32 %v2718_v42, %v2717_v4 }
 0x151   :  { %v2460_v31 = vmax.f32 %v1445_v22, 0.0  ;;  %v2794_v45 = vsel %vm2650_vm1, %v2461_v16, 0.0  ;;  %v3076_v0 = vsel %vm2650_vm1, %v2592_v48, 0.0  ;;  %v2595_v1 = vmax.f32 %v4264_v61, 0.0 }
 0x152   :  { %v2784_v35 = vadd.f32 %v2783_v19, %v2782_v6  ;;  %v4066_v36 = vpop.f32.mrf.mxu0  ;;  %v3077_v11 = vadd.f32 %v3076_v0, %v3075_v57  ;;  %v2115_v13 = vpop.f32.mrf.mxu1 }
 0x153   :  { %v2792_v46 = vsel %vm2650_vm1, %v2460_v31, 0.0  ;;  %v2463_v54 = vmax.f32 %v4066_v36, 0.0  ;;  %v2594_v19 = vmax.f32 %v2115_v13, 0.0  ;;  %v3082_v55 = vsel %vm2650_vm1, %v2595_v1, 0.0 }
 0x154   :  { %v2785_v51 = vrot.slane %v2784_v35, 2  ;;  %v2793_v53 = vadd.f32 %v2792_v46, %v2791_v21  ;;  %v1455_v56 = vpop.f32.mrf.mxu0  ;;  %v3079_v31 = vadd.f32 %v3078_v63, %v3077_v11  ;;  %v4267_v32 = vpop.f32.mrf.mxu1  ;;  %v3204_v46 = vmul.f32 0.00390625, %v2719_v15 }
 0x155   :  { %v2462_v62 = vmax.f32 %v1455_v56, 0.0  ;;  %v2798_v22 = vsel %vm2650_vm1, %v2463_v54, 0.0  ;;  %v2597_v36 = vmax.f32 %v4267_v32, 0.0 }
 0x156   :  { %v2786_v6 = vadd.f32 %v2785_v51, %v2784_v35  ;;  %v2795_v7 = vadd.f32 %v2794_v45, %v2793_v53  ;;  %v4069_v10 = vpop.f32.mrf.mxu0  ;;  %v3080_v35 = vsel %vm2650_vm1, %v2594_v19, 0.0  ;;  %v2125_v45 = vpop.f32.mrf.mxu1 }
 0x157   :  { %v2796_v16 = vsel %vm2650_vm1, %v2462_v62, 0.0  ;;  %v2465_v18 = vmax.f32 %v4069_v10, 0.0  ;;  %v3081_v42 = vadd.f32 %v3080_v35, %v3079_v31  ;;  %v2596_v53 = vmax.f32 %v2125_v45, 0.0 }
 0x158   :  { %v2787_v21 = vrot.slane %v2786_v6, 1  ;;  %v2797_v26 = vadd.f32 %v2796_v16, %v2795_v7  ;;  %v1465_v28 = vpop.f32.mrf.mxu0  ;;  %v4270_v63 = vpop.f32.mrf.mxu1  ;;  %v3086_v1 = vsel %vm2650_vm1, %v2597_v36, 0.0 }
 0x159   :  { %v2464_v8 = vmax.f32 %v1465_v28, 0.0  ;;  %v2802_v48 = vsel %vm2650_vm1, %v2465_v18, 0.0  ;;  %v3083_v62 = vadd.f32 %v3082_v55, %v3081_v42  ;;  %v2599_v7 = vmax.f32 %v4270_v63, 0.0 }
 0x15a   :  { %v2788_v38 = vadd.f32 %v2787_v21, %v2786_v6  ;;  %v2799_v4 = vadd.f32 %v2798_v22, %v2797_v26  ;;  %v4072_v40 = vpop.f32.mrf.mxu0  ;;  %v3084_v6 = vsel %vm2650_vm1, %v2596_v53, 0.0  ;;  %v2135_v16 = vpop.f32.mrf.mxu1 }
 0x15b   :  { %v2800_v51 = vsel %vm2650_vm1, %v2464_v8, 0.0  ;;  %v2467_v57 = vmax.f32 %v4072_v40, 0.0  ;;  %v3085_v15 = vadd.f32 %v3084_v6, %v3083_v62  ;;  %v2598_v19 = vmax.f32 %v2135_v16, 0.0 }
 0x15c   :  { %v3205_v54 = vmul.f32 0.00390625, %v2788_v38  ;;  %v2801_v56 = vadd.f32 %v2800_v51, %v2799_v4  ;;  %v1475_v61 = vpop.f32.mrf.mxu0  ;;  %v4273_v32 = vpop.f32.mrf.mxu1  ;;  %v3090_v55 = vsel %vm2650_vm1, %v2599_v7, 0.0 }
 0x15d   :  { %v2466_v0 = vmax.f32 %v1475_v61, 0.0  ;;  %v2806_v21 = vsel %vm2650_vm1, %v2467_v57, 0.0  ;;  %v3087_v31 = vadd.f32 %v3086_v1, %v3085_v15  ;;  %v3088_v35 = vsel %vm2650_vm1, %v2598_v19, 0.0 }
 0x15e   :  { %v5664_v10 = vsel %vm3233_vm2, %v3205_v54, %v3204_v46  ;;  %v2803_v11 = vadd.f32 %v2802_v48, %v2801_v56  ;;  %v4075_v13 = vpop.f32.mrf.mxu0  ;;  %v2601_v36 = vmax.f32 %v4273_v32, 0.0  ;;  %v2145_v42 = vpop.f32.mrf.mxu1 }
 0x15f   :  { %v2804_v18 = vsel %vm2650_vm1, %v2466_v0, 0.0  ;;  %v2469_v26 = vmax.f32 %v4075_v13, 0.0  ;;  %v3089_v40 = vadd.f32 %v3088_v35, %v3087_v31  ;;  %v2600_v46 = vmax.f32 %v2145_v42, 0.0 }
 0x160   :  { %v2805_v22 = vadd.f32 %v2804_v18, %v2803_v11  ;;  %v1485_v28 = vpop.f32.mrf.mxu0  ;;  %v4276_v57 = vpop.f32.mrf.mxu1  ;;  %v3094_v62 = vsel %vm2650_vm1, %v2601_v36, 0.0 }
 0x161   :  { %v2468_v8 = vmax.f32 %v1485_v28, 0.0  ;;  %v2810_v48 = vsel %vm2650_vm1, %v2469_v26, 0.0  ;;  %v3091_v56 = vadd.f32 %v3090_v55, %v3089_v40  ;;  %v3092_v63 = vsel %vm2650_vm1, %v2600_v46, 0.0 }
 0x162   :  { %v2807_v38 = vadd.f32 %v2806_v21, %v2805_v22  ;;  %v4078_v4 = vpop.f32.mrf.mxu0  ;;  %v2603_v0 = vmax.f32 %v4276_v57, 0.0  ;;  %v2155_v11 = vpop.f32.mrf.mxu1 }
 0x163   :  { %v2808_v45 = vsel %vm2650_vm1, %v2468_v8, 0.0  ;;  %v2471_v53 = vmax.f32 %v4078_v4, 0.0  ;;  %v3093_v7 = vadd.f32 %v3092_v63, %v3091_v56  ;;  %v2602_v15 = vmax.f32 %v2155_v11, 0.0 }
 0x164   :  { %v2809_v51 = vadd.f32 %v2808_v45, %v2807_v38  ;;  %v1495_v54 = vpop.f32.mrf.mxu0  ;;  %v4279_v26 = vpop.f32.mrf.mxu1  ;;  %v3098_v31 = vsel %vm2650_vm1, %v2603_v0, 0.0 }
 0x165   :  { %v2470_v61 = vmax.f32 %v1495_v54, 0.0  ;;  %v2814_v16 = vsel %vm2650_vm1, %v2471_v53, 0.0  ;;  %v3095_v22 = vadd.f32 %v3094_v62, %v3093_v7  ;;  %v3096_v32 = vsel %vm2650_vm1, %v2602_v15, 0.0 }
 0x166   :  { %v2811_v1 = vadd.f32 %v2810_v48, %v2809_v51  ;;  %v4081_v6 = vpop.f32.mrf.mxu0  ;;  %v2605_v8 = vmax.f32 %v4279_v26, 0.0  ;;  %v2165_v38 = vpop.f32.mrf.mxu1 }
 0x167   :  { %v2812_v13 = vsel %vm2650_vm1, %v2470_v61, 0.0  ;;  %v2473_v19 = vmax.f32 %v4081_v6, 0.0  ;;  %v3097_v36 = vadd.f32 %v3096_v32, %v3095_v22  ;;  %v2604_v40 = vmax.f32 %v2165_v38, 0.0 }
 0x168   :  { %v2813_v18 = vadd.f32 %v2812_v13, %v2811_v1  ;;  %v1505_v21 = vpop.f32.mrf.mxu0  ;;  %v4282_v53 = vpop.f32.mrf.mxu1  ;;  %v3102_v56 = vsel %vm2650_vm1, %v2605_v8, 0.0 }
 0x169   :  { %v2472_v28 = vmax.f32 %v1505_v21, 0.0  ;;  %v2818_v42 = vsel %vm2650_vm1, %v2473_v19, 0.0  ;;  %v3099_v51 = vadd.f32 %v3098_v31, %v3097_v36  ;;  %v3100_v57 = vsel %vm2650_vm1, %v2604_v40, 0.0 }
 0x16a   :  { %v2815_v55 = vadd.f32 %v2814_v16, %v2813_v18  ;;  %v4084_v35 = vpop.f32.mrf.mxu0  ;;  %v2607_v61 = vmax.f32 %v4282_v53, 0.0  ;;  %v2175_v1 = vpop.f32.mrf.mxu1 }
 0x16b   :  { %v2816_v4 = vsel %vm2650_vm1, %v2472_v28, 0.0  ;;  %v2475_v46 = vmax.f32 %v4084_v35, 0.0  ;;  %v3101_v0 = vadd.f32 %v3100_v57, %v3099_v51  ;;  %v2606_v7 = vmax.f32 %v2175_v1, 0.0 }
 0x16c   :  { %v2817_v45 = vadd.f32 %v2816_v4, %v2815_v55  ;;  %v1515_v48 = vpop.f32.mrf.mxu0  ;;  %v4285_v19 = vpop.f32.mrf.mxu1  ;;  %v3106_v22 = vsel %vm2650_vm1, %v2607_v61, 0.0 }
 0x16d   :  { %v2474_v54 = vmax.f32 %v1515_v48, 0.0  ;;  %v2822_v11 = vsel %vm2650_vm1, %v2475_v46, 0.0  ;;  %v3103_v18 = vadd.f32 %v3102_v56, %v3101_v0  ;;  %v3104_v26 = vsel %vm2650_vm1, %v2606_v7, 0.0 }
 0x16e   :  { %v2819_v62 = vadd.f32 %v2818_v42, %v2817_v45  ;;  %v4087_v63 = vpop.f32.mrf.mxu0  ;;  %v2609_v28 = vmax.f32 %v4285_v19, 0.0  ;;  %v2185_v55 = vpop.f32.mrf.mxu1 }
 0x16f   :  { %v2820_v6 = vsel %vm2650_vm1, %v2474_v54, 0.0  ;;  %v2477_v15 = vmax.f32 %v4087_v63, 0.0  ;;  %v3105_v8 = vadd.f32 %v3104_v26, %v3103_v18  ;;  %v2608_v36 = vmax.f32 %v2185_v55, 0.0 }
 0x170   :  { %v2821_v13 = vadd.f32 %v2820_v6, %v2819_v62  ;;  %v1525_v16 = vpop.f32.mrf.mxu0  ;;  %v4288_v46 = vpop.f32.mrf.mxu1  ;;  %v3110_v51 = vsel %vm2650_vm1, %v2609_v28, 0.0 }
 0x171   :  { %v2476_v21 = vmax.f32 %v1525_v16, 0.0  ;;  %v2826_v38 = vsel %vm2650_vm1, %v2477_v15, 0.0  ;;  %v3107_v45 = vadd.f32 %v3106_v22, %v3105_v8  ;;  %v3108_v53 = vsel %vm2650_vm1, %v2608_v36, 0.0 }
 0x172   :  { %v2823_v31 = vadd.f32 %v2822_v11, %v2821_v13  ;;  %v4090_v32 = vpop.f32.mrf.mxu0  ;;  %v2611_v54 = vmax.f32 %v4288_v46, 0.0  ;;  %v2195_v62 = vpop.f32.mrf.mxu1 }
 0x173   :  { %v2824_v35 = vsel %vm2650_vm1, %v2476_v21, 0.0  ;;  %v2479_v40 = vmax.f32 %v4090_v32, 0.0  ;;  %v3109_v61 = vadd.f32 %v3108_v53, %v3107_v45  ;;  %v2610_v0 = vmax.f32 %v2195_v62, 0.0 }
 0x174   :  { %v2825_v4 = vadd.f32 %v2824_v35, %v2823_v31  ;;  %v1535_v42 = vpop.f32.mrf.mxu0  ;;  %v4291_v15 = vpop.f32.mrf.mxu1  ;;  %v3114_v18 = vsel %vm2650_vm1, %v2611_v54, 0.0 }
 0x175   :  { %v2478_v48 = vmax.f32 %v1535_v42, 0.0  ;;  %v2830_v1 = vsel %vm2650_vm1, %v2479_v40, 0.0  ;;  %v3111_v13 = vadd.f32 %v3110_v51, %v3109_v61  ;;  %v3112_v19 = vsel %vm2650_vm1, %v2610_v0, 0.0 }
 0x176   :  { %v2827_v56 = vadd.f32 %v2826_v38, %v2825_v4  ;;  %v4093_v57 = vpop.f32.mrf.mxu0  ;;  %v2613_v21 = vmax.f32 %v4291_v15, 0.0  ;;  %v2205_v31 = vpop.f32.mrf.mxu1 }
 0x177   :  { %v2828_v63 = vsel %vm2650_vm1, %v2478_v48, 0.0  ;;  %v2481_v7 = vmax.f32 %v4093_v57, 0.0  ;;  %v3113_v28 = vadd.f32 %v3112_v19, %v3111_v13  ;;  %v2612_v55 = vmax.f32 %v2205_v31, 0.0  ;;  %v3213_v13 = vld [vmem:[%s5898_s2] sm:$0xff] }
 0x178   :  { %v2829_v6 = vadd.f32 %v2828_v63, %v2827_v56  ;;  %v1545_v11 = vpop.f32.mrf.mxu0  ;;  %v4294_v40 = vpop.f32.mrf.mxu1  ;;  %v3118_v45 = vsel %vm2650_vm1, %v2613_v21, 0.0 }
 0x179   :  { %v2480_v16 = vmax.f32 %v1545_v11, 0.0  ;;  %v2834_v35 = vsel %vm2650_vm1, %v2481_v7, 0.0  ;;  %v3115_v4 = vadd.f32 %v3114_v18, %v3113_v28  ;;  %v3116_v46 = vsel %vm2650_vm1, %v2612_v55, 0.0  ;;  %v3214_v11 = vld [vmem:[%s5898_s2 + $0x8] sm:$0xff] }
 0x17a   :  { %v2831_v22 = vadd.f32 %v2830_v1, %v2829_v6  ;;  %v4096_v26 = vpop.f32.mrf.mxu0  ;;  %v2615_v48 = vmax.f32 %v4294_v40, 0.0  ;;  %v2215_v56 = vpop.f32.mrf.mxu1  ;;  %4359 = vmatpush3.msra.mxu1 %v3214_v11 }
 0x17b   :  { %v2832_v32 = vsel %vm2650_vm1, %v2480_v16, 0.0  ;;  %v2483_v8 = vmax.f32 %v4096_v26, 0.0  ;;  %v3117_v54 = vadd.f32 %v3116_v46, %v3115_v4  ;;  %v2614_v62 = vmax.f32 %v2215_v56, 0.0  ;;  %4360 = vmatprep.subr.mxu1 %v4395_v47 }
 0x17c   :  { %v2833_v36 = vadd.f32 %v2832_v32, %v2831_v22  ;;  %v1555_v38 = vpop.f32.mrf.mxu0  ;;  %v4297_v7 = vpop.f32.mrf.mxu1  ;;  %v3122_v16 = vsel %vm2650_vm1, %v2615_v48, 0.0  ;;  %4361 = vmatpush3.msra.mxu1 %v3213_v13 }
 0x17d   :  { %v2482_v42 = vmax.f32 %v1555_v38, 0.0  ;;  %v2838_v57 = vsel %vm2650_vm1, %v2483_v8, 0.0  ;;  %v3119_v6 = vadd.f32 %v3118_v45, %v3117_v54  ;;  %v3120_v18 = vsel %vm2650_vm1, %v2614_v62, 0.0  ;;  %4365 = vmatprep.subr.mxu1 %v4395_v47 }
 0x17e   :  { %v2835_v51 = vadd.f32 %v2834_v35, %v2833_v36  ;;  %v4099_v53 = vpop.f32.mrf.mxu0  ;;  %v2617_v19 = vmax.f32 %v4297_v7, 0.0  ;;  %v2225_v28 = vpop.f32.mrf.mxu1 }
 0x17f   :  { %v2836_v61 = vsel %vm2650_vm1, %v2482_v42, 0.0  ;;  %v2485_v0 = vmax.f32 %v4099_v53, 0.0  ;;  %v3121_v26 = vadd.f32 %v3120_v18, %v3119_v6  ;;  %v2616_v32 = vmax.f32 %v2225_v28, 0.0 }
 0x180   :  { %v2837_v63 = vadd.f32 %v2836_v61, %v2835_v51  ;;  %v1565_v1 = vpop.f32.mrf.mxu0  ;;  %v4300_v4 = vpop.f32.mrf.mxu1  ;;  %v3126_v42 = vsel %vm2650_vm1, %v2617_v19, 0.0 }
 0x181   :  { %v2484_v15 = vmax.f32 %v1565_v1, 0.0  ;;  %v2842_v8 = vsel %vm2650_vm1, %v2485_v0, 0.0  ;;  %v3123_v38 = vadd.f32 %v3122_v16, %v3121_v26  ;;  %v3124_v45 = vsel %vm2650_vm1, %v2616_v32, 0.0 }
 0x182   :  { %v2839_v21 = vadd.f32 %v2838_v57, %v2837_v63  ;;  %v4102_v22 = vpop.f32.mrf.mxu0  ;;  %v2619_v46 = vmax.f32 %v4300_v4, 0.0  ;;  %v2235_v54 = vpop.f32.mrf.mxu1 }
 0x183   :  { %v2840_v31 = vsel %vm2650_vm1, %v2484_v15, 0.0  ;;  %v2487_v35 = vmax.f32 %v4102_v22, 0.0  ;;  %v3125_v53 = vadd.f32 %v3124_v45, %v3123_v38  ;;  %v2618_v57 = vmax.f32 %v2235_v54, 0.0 }
 0x184   :  { %v2841_v55 = vadd.f32 %v2840_v31, %v2839_v21  ;;  %v1575_v36 = vpop.f32.mrf.mxu0  ;;  %v3135_v0 = vsel %vm2650_vm1, %v2619_v46, 0.0  ;;  %v4303_v1 = vpop.f32.mrf.mxu1 }
 0x185   :  { %v2486_v40 = vmax.f32 %v1575_v36, 0.0  ;;  %v5717_v63 = vadd.f32 %v3126_v42, %v3125_v53  ;;  %v2846_v6 = vsel %vm2650_vm1, %v2487_v35, 0.0  ;;  %v3134_v13 = vsel %vm2650_vm1, %v2618_v57, 0.0 }
 0x186   :  { %v2843_v48 = vadd.f32 %v2842_v8, %v2841_v55  ;;  %v4105_v51 = vpop.f32.mrf.mxu0  ;;  %v2245_v18 = vpop.f32.mrf.mxu1  ;;  %v3136_v22 = vadd.f32 %v3135_v0, %v3134_v13  ;;  %v2621_v32 = vmax.f32 %v4303_v1, 0.0 }
 0x187   :  { %v2844_v56 = vsel %vm2650_vm1, %v2486_v40, 0.0  ;;  %v2489_v7 = vmax.f32 %v4105_v51, 0.0  ;;  %v2620_v26 = vmax.f32 %v2245_v18, 0.0 }
 0x188   :  { %v2845_v61 = vadd.f32 %v2844_v56, %v2843_v48  ;;  %v1585_v62 = vpop.f32.mrf.mxu0  ;;  %v4306_v8 = vpop.f32.mrf.mxu1  ;;  %v3139_v54 = vsel %vm2650_vm1, %v2621_v32, 0.0 }
 0x189   :  { %v2488_v11 = vmax.f32 %v1585_v62, 0.0  ;;  %v2850_v55 = vsel %vm2650_vm1, %v2489_v7, 0.0  ;;  %v3137_v35 = vsel %vm2650_vm1, %v2620_v26, 0.0 }
 0x18a   :  { %v2847_v15 = vadd.f32 %v2846_v6, %v2845_v61  ;;  %v4108_v16 = vpop.f32.mrf.mxu0  ;;  %v2255_v40 = vpop.f32.mrf.mxu1  ;;  %v3138_v46 = vadd.f32 %v3137_v35, %v3136_v22 }
 0x18b   :  { %v2848_v19 = vsel %vm2650_vm1, %v2488_v11, 0.0  ;;  %v2491_v21 = vmax.f32 %v4108_v16, 0.0  ;;  %v2622_v56 = vmax.f32 %v2255_v40, 0.0  ;;  %v2623_v16 = vmax.f32 %v4306_v8, 0.0 }
 0x18c   :  { %v2849_v28 = vadd.f32 %v2848_v19, %v2847_v15  ;;  %v1595_v31 = vpop.f32.mrf.mxu0  ;;  %v4309_v62 = vpop.f32.mrf.mxu1  ;;  %v3140_v7 = vadd.f32 %v3139_v54, %v3138_v46 }
 0x18d   :  { %v2490_v36 = vmax.f32 %v1595_v31, 0.0  ;;  %v2859_v42 = vsel %vm2650_vm1, %v2491_v21, 0.0  ;;  %v3141_v18 = vsel %vm2650_vm1, %v2622_v56, 0.0  ;;  %v3143_v40 = vsel %vm2650_vm1, %v2623_v16, 0.0 }
 0x18e   :  { %v2851_v38 = vadd.f32 %v2850_v55, %v2849_v28  ;;  %v4111_v4 = vpop.f32.mrf.mxu0  ;;  %v2265_v26 = vpop.f32.mrf.mxu1 }
 0x18f   :  { %v2858_v45 = vsel %vm2650_vm1, %v2490_v36, 0.0  ;;  %v2493_v57 = vmax.f32 %v4111_v4, 0.0  ;;  %v3142_v36 = vadd.f32 %v3141_v18, %v3140_v7 }
 0x190   :  { %v2852_v48 = vrot.slane %v2851_v38, 4  ;;  %v2860_v51 = vadd.f32 %v2859_v42, %v2858_v45  ;;  %v1605_v53 = vpop.f32.mrf.mxu0  ;;  %v2624_v42 = vmax.f32 %v2265_v26, 0.0 }
 0x191   :  { %v2492_v61 = vmax.f32 %v1605_v53, 0.0  ;;  %v2863_v19 = vsel %vm2650_vm1, %v2493_v57, 0.0  ;;  %v3144_v57 = vadd.f32 %v3143_v40, %v3142_v36 }
 0x192   :  { %v2853_v0 = vadd.f32 %v2852_v48, %v2851_v38  ;;  %v4114_v1 = vpop.f32.mrf.mxu0  ;;  %v4312_v48 = vpop.f32.mrf.mxu1  ;;  %v3145_v7 = vsel %vm2650_vm1, %v2624_v42, 0.0 }
 0x193   :  { %v2861_v6 = vsel %vm2650_vm1, %v2492_v61, 0.0  ;;  %v2495_v21 = vmax.f32 %v4114_v1, 0.0  ;;  %v3146_v26 = vadd.f32 %v3145_v7, %v3144_v57 }
 0x194   :  { %v2854_v11 = vrot.slane %v2853_v0, 2  ;;  %v2862_v13 = vadd.f32 %v2861_v6, %v2860_v51  ;;  %v1615_v15 = vpop.f32.mrf.mxu0  ;;  %v2625_v6 = vmax.f32 %v4309_v62, 0.0  ;;  %v2275_v16 = vpop.f32.mrf.mxu1 }
 0x195   :  { %v2494_v22 = vmax.f32 %v1615_v15, 0.0  ;;  %v2867_v8 = vsel %vm2650_vm1, %v2495_v21, 0.0  ;;  %v2626_v62 = vmax.f32 %v2275_v16, 0.0 }
 0x196   :  { %v2855_v28 = vadd.f32 %v2854_v11, %v2853_v0  ;;  %v2864_v31 = vadd.f32 %v2863_v19, %v2862_v13  ;;  %v4117_v32 = vpop.f32.mrf.mxu0 }
 0x197   :  { %v2865_v55 = vsel %vm2650_vm1, %v2494_v22, 0.0  ;;  %v2497_v45 = vmax.f32 %v4117_v32, 0.0  ;;  %v3147_v32 = vsel %vm2650_vm1, %v2625_v6, 0.0 }
 0x198   :  { %v2856_v35 = vrot.slane %v2855_v28, 1  ;;  %v2866_v38 = vadd.f32 %v2865_v55, %v2864_v31  ;;  %v1625_v4 = vpop.f32.mrf.mxu0  ;;  %v3148_v42 = vadd.f32 %v3147_v32, %v3146_v26 }
 0x199   :  { %v2496_v46 = vmax.f32 %v1625_v4, 0.0  ;;  %v2871_v11 = vsel %vm2650_vm1, %v2497_v45, 0.0 }
 0x19a   :  { %v2857_v51 = vadd.f32 %v2856_v35, %v2855_v28  ;;  %v2868_v53 = vadd.f32 %v2867_v8, %v2866_v38  ;;  %v4120_v54 = vpop.f32.mrf.mxu0  ;;  %v4315_v38 = vpop.f32.mrf.mxu1 }
 0x19b   :  { %v2869_v56 = vsel %vm2650_vm1, %v2496_v46, 0.0  ;;  %v2499_v13 = vmax.f32 %v4120_v54, 0.0  ;;  %v2627_v46 = vmax.f32 %v4312_v48, 0.0 }
 0x19c   :  { %v3206_v61 = vmul.f32 0.00390625, %v2857_v51  ;;  %v2870_v0 = vadd.f32 %v2869_v56, %v2868_v53  ;;  %v1635_v1 = vpop.f32.mrf.mxu0  ;;  %v3149_v51 = vsel %vm2650_vm1, %v2626_v62, 0.0  ;;  %v2285_v57 = vpop.f32.mrf.mxu1 }
 0x19d   :  { %v2498_v15 = vmax.f32 %v1635_v1, 0.0  ;;  %v2875_v55 = vsel %vm2650_vm1, %v2499_v13, 0.0  ;;  %v3150_v6 = vadd.f32 %v3149_v51, %v3148_v42  ;;  %v3151_v13 = vsel %vm2650_vm1, %v2627_v46, 0.0 }
 0x19e   :  { %v5738_v18 = vsel %vm3235_vm4, %v3206_v61, %v5664_v10  ;;  %v2872_v19 = vadd.f32 %v2871_v11, %v2870_v0  ;;  %v4123_v21 = vpop.f32.mrf.mxu0 }
 0x19f   :  { %v2873_v22 = vsel %vm2650_vm1, %v2498_v15, 0.0  ;;  %v2501_v36 = vmax.f32 %v4123_v21, 0.0  ;;  %v2628_v15 = vmax.f32 %v2285_v57, 0.0  ;;  %v4318_v21 = vpop.f32.mrf.mxu1 }
 0x1a0   :  { %v2874_v28 = vadd.f32 %v2873_v22, %v2872_v19  ;;  %v1645_v31 = vpop.f32.mrf.mxu0 }
 0x1a1   :  { %v2500_v35 = vmax.f32 %v1645_v31, 0.0  ;;  %v2879_v53 = vsel %vm2650_vm1, %v2501_v36, 0.0  ;;  %v3152_v31 = vadd.f32 %v3151_v13, %v3150_v6  ;;  %v3153_v36 = vsel %vm2650_vm1, %v2628_v15, 0.0 }
 0x1a2   :  { %v2876_v4 = vadd.f32 %v2875_v55, %v2874_v28  ;;  %v4126_v40 = vpop.f32.mrf.mxu0  ;;  %v2629_v55 = vmax.f32 %v4315_v38, 0.0 }
 0x1a3   :  { %v2877_v10 = vsel %vm2650_vm1, %v2500_v35, 0.0  ;;  %v2503_v54 = vmax.f32 %v4126_v40, 0.0  ;;  %v3154_v46 = vadd.f32 %v3153_v36, %v3152_v31 }
 0x1a4   :  { %v2878_v8 = vadd.f32 %v2877_v10, %v2876_v4  ;;  %v1655_v45 = vpop.f32.mrf.mxu0  ;;  %v2295_v10 = vpop.f32.mrf.mxu1 }
 0x1a5   :  { %v2502_v56 = vmax.f32 %v1655_v45, 0.0  ;;  %v2883_v16 = vsel %vm2650_vm1, %v2503_v54, 0.0  ;;  %v3155_v54 = vsel %vm2650_vm1, %v2629_v55, 0.0 }
 0x1a6   :  { %v2880_v61 = vadd.f32 %v2879_v53, %v2878_v8  ;;  %v4129_v0 = vpop.f32.mrf.mxu0 }
 0x1a7   :  { %v2881_v1 = vsel %vm2650_vm1, %v2502_v56, 0.0  ;;  %v2505_v48 = vmax.f32 %v4129_v0, 0.0  ;;  %v2630_v56 = vmax.f32 %v2295_v10, 0.0  ;;  %v4321_v0 = vpop.f32.mrf.mxu1 }
 0x1a8   :  { %v2882_v7 = vadd.f32 %v2881_v1, %v2880_v61  ;;  %v1665_v11 = vpop.f32.mrf.mxu0 }
 0x1a9   :  { %v2504_v19 = vmax.f32 %v1665_v11, 0.0  ;;  %v2887_v35 = vsel %vm2650_vm1, %v2505_v48, 0.0  ;;  %v3156_v11 = vadd.f32 %v3155_v54, %v3154_v46  ;;  %v3157_v48 = vsel %vm2650_vm1, %v2630_v56, 0.0 }
 0x1aa   :  { %v2884_v22 = vadd.f32 %v2883_v16, %v2882_v7  ;;  %v4132_v26 = vpop.f32.mrf.mxu0  ;;  %v2631_v16 = vmax.f32 %v4318_v21, 0.0 }
 0x1ab   :  { %v2885_v28 = vsel %vm2650_vm1, %v2504_v19, 0.0  ;;  %v2507_v4 = vmax.f32 %v4132_v26, 0.0  ;;  %v3158_v55 = vadd.f32 %v3157_v48, %v3156_v11 }
 0x1ac   :  { %v2886_v32 = vadd.f32 %v2885_v28, %v2884_v22  ;;  %v1675_v62 = vpop.f32.mrf.mxu0  ;;  %v2305_v28 = vpop.f32.mrf.mxu1 }
 0x1ad   :  { %v2506_v40 = vmax.f32 %v1675_v62, 0.0  ;;  %v2891_v57 = vsel %vm2650_vm1, %v2507_v4, 0.0  ;;  %v3159_v4 = vsel %vm2650_vm1, %v2631_v16, 0.0 }
 0x1ae   :  { %v2888_v42 = vadd.f32 %v2887_v35, %v2886_v32  ;;  %v4135_v8 = vpop.f32.mrf.mxu0 }
 0x1af   :  { %v2889_v45 = vsel %vm2650_vm1, %v2506_v40, 0.0  ;;  %v2509_v38 = vmax.f32 %v4135_v8, 0.0  ;;  %v2632_v40 = vmax.f32 %v2305_v28, 0.0  ;;  %v4324_v8 = vpop.f32.mrf.mxu1 }
 0x1b0   :  { %v2890_v51 = vadd.f32 %v2889_v45, %v2888_v42  ;;  %v1685_v53 = vpop.f32.mrf.mxu0 }
 0x1b1   :  { %v2508_v61 = vmax.f32 %v1685_v53, 0.0  ;;  %v2895_v19 = vsel %vm2650_vm1, %v2509_v38, 0.0  ;;  %v3160_v53 = vadd.f32 %v3159_v4, %v3158_v55  ;;  %v3161_v38 = vsel %vm2650_vm1, %v2632_v40, 0.0 }
 0x1b2   :  { %v2892_v1 = vadd.f32 %v2891_v57, %v2890_v51  ;;  %v4138_v6 = vpop.f32.mrf.mxu0  ;;  %v2633_v57 = vmax.f32 %v4321_v0, 0.0 }
 0x1b3   :  { %v2893_v7 = vsel %vm2650_vm1, %v2508_v61, 0.0  ;;  %v2511_v22 = vmax.f32 %v4138_v6, 0.0  ;;  %v3162_v16 = vadd.f32 %v3161_v38, %v3160_v53 }
 0x1b4   :  { %v2894_v13 = vadd.f32 %v2893_v7, %v2892_v1  ;;  %v1695_v15 = vpop.f32.mrf.mxu0  ;;  %v2315_v7 = vpop.f32.mrf.mxu1 }
 0x1b5   :  { %v2510_v26 = vmax.f32 %v1695_v15, 0.0  ;;  %v2899_v10 = vsel %vm2650_vm1, %v2511_v22, 0.0  ;;  %v3163_v22 = vsel %vm2650_vm1, %v2633_v57, 0.0 }
 0x1b6   :  { %v2896_v31 = vadd.f32 %v2895_v19, %v2894_v13  ;;  %v4141_v32 = vpop.f32.mrf.mxu0 }
 0x1b7   :  { %v2897_v62 = vsel %vm2650_vm1, %v2510_v26, 0.0  ;;  %v2513_v21 = vmax.f32 %v4141_v32, 0.0  ;;  %v2634_v26 = vmax.f32 %v2315_v7, 0.0  ;;  %v4327_v32 = vpop.f32.mrf.mxu1 }
 0x1b8   :  { %v2898_v36 = vadd.f32 %v2897_v62, %v2896_v31  ;;  %v1705_v35 = vpop.f32.mrf.mxu0 }
 0x1b9   :  { %v2512_v42 = vmax.f32 %v1705_v35, 0.0  ;;  %v2903_v61 = vsel %vm2650_vm1, %v2513_v21, 0.0  ;;  %v3164_v35 = vadd.f32 %v3163_v22, %v3162_v16  ;;  %v3165_v21 = vsel %vm2650_vm1, %v2634_v26, 0.0 }
 0x1ba   :  { %v2900_v45 = vadd.f32 %v2899_v10, %v2898_v36  ;;  %v4144_v46 = vpop.f32.mrf.mxu0  ;;  %v2635_v10 = vmax.f32 %v4324_v8, 0.0 }
 0x1bb   :  { %v2901_v51 = vsel %vm2650_vm1, %v2512_v42, 0.0  ;;  %v2515_v1 = vmax.f32 %v4144_v46, 0.0  ;;  %v3166_v57 = vadd.f32 %v3165_v21, %v3164_v35 }
 0x1bc   :  { %v2902_v54 = vadd.f32 %v2901_v51, %v2900_v45  ;;  %v1715_v56 = vpop.f32.mrf.mxu0  ;;  %v2325_v51 = vpop.f32.mrf.mxu1 }
 0x1bd   :  { %v2514_v6 = vmax.f32 %v1715_v56, 0.0  ;;  %v2907_v28 = vsel %vm2650_vm1, %v2515_v1, 0.0  ;;  %v3167_v1 = vsel %vm2650_vm1, %v2635_v10, 0.0 }
 0x1be   :  { %v2904_v11 = vadd.f32 %v2903_v61, %v2902_v54  ;;  %v4147_v13 = vpop.f32.mrf.mxu0 }
 0x1bf   :  { %v2905_v15 = vsel %vm2650_vm1, %v2514_v6, 0.0  ;;  %v2517_v0 = vmax.f32 %v4147_v13, 0.0  ;;  %v2636_v6 = vmax.f32 %v2325_v51, 0.0  ;;  %v4330_v13 = vpop.f32.mrf.mxu1 }
 0x1c0   :  { %v2906_v48 = vadd.f32 %v2905_v15, %v2904_v11  ;;  %v1725_v19 = vpop.f32.mrf.mxu0 }
 0x1c1   :  { %v2516_v31 = vmax.f32 %v1725_v19, 0.0  ;;  %v2911_v42 = vsel %vm2650_vm1, %v2517_v0, 0.0  ;;  %v3168_v19 = vadd.f32 %v3167_v1, %v3166_v57  ;;  %v3169_v0 = vsel %vm2650_vm1, %v2636_v6, 0.0 }
 0x1c2   :  { %v2908_v62 = vadd.f32 %v2907_v28, %v2906_v48  ;;  %v4150_v55 = vpop.f32.mrf.mxu0  ;;  %v2637_v28 = vmax.f32 %v4327_v32, 0.0 }
 0x1c3   :  { %v2909_v36 = vsel %vm2650_vm1, %v2516_v31, 0.0  ;;  %v2519_v45 = vmax.f32 %v4150_v55, 0.0  ;;  %v3170_v10 = vadd.f32 %v3169_v0, %v3168_v19  ;;  %v2528_v0 = vmax.f32 %v5259_v30, 0.0 }
 0x1c4   :  { %v2910_v4 = vadd.f32 %v2909_v36, %v2908_v62  ;;  %v1735_v40 = vpop.f32.mrf.mxu0  ;;  %v2335_v36 = vpop.f32.mrf.mxu1 }
 0x1c5   :  { %v2518_v46 = vmax.f32 %v1735_v40, 0.0  ;;  %v2915_v7 = vsel %vm2650_vm1, %v2519_v45, 0.0  ;;  %v3171_v45 = vsel %vm2650_vm1, %v2637_v28, 0.0 }
 0x1c6   :  { %v2912_v53 = vadd.f32 %v2911_v42, %v2910_v4  ;;  %v4153_v54 = vpop.f32.mrf.mxu0  ;;  %v3172_v1 = vadd.f32 %v3171_v45, %v3170_v10  ;;  %v2938_v45 = vsel %vm2650_vm1, %v2528_v0, 0.0 }
 0x1c7   :  { %v2913_v56 = vsel %vm2650_vm1, %v2518_v46, 0.0  ;;  %v2521_v8 = vmax.f32 %v4153_v54, 0.0  ;;  %v2638_v46 = vmax.f32 %v2335_v36, 0.0  ;;  %v4333_v54 = vpop.f32.mrf.mxu1 }
 0x1c8   :  { %v2914_v38 = vadd.f32 %v2913_v56, %v2912_v53  ;;  %v1745_v61 = vpop.f32.mrf.mxu0 }
 0x1c9   :  { %v2520_v11 = vmax.f32 %v1745_v61, 0.0  ;;  %v2919_v31 = vsel %vm2650_vm1, %v2521_v8, 0.0 }
 0x1ca   :  { %v2916_v15 = vadd.f32 %v2915_v7, %v2914_v38  ;;  %v4156_v16 = vpop.f32.mrf.mxu0 }
 0x1cb   :  { %v2917_v48 = vsel %vm2650_vm1, %v2520_v11, 0.0  ;;  %v2523_v62 = vmax.f32 %v4156_v16, 0.0  ;;  %v2639_v11 = vmax.f32 %v4330_v13, 0.0  ;;  %v2529_v13 = vmax.f32 %v5251_v25, 0.0 }
 0x1cc   :  { %v2918_v22 = vadd.f32 %v2917_v48, %v2916_v15  ;;  %v1755_v26 = vpop.f32.mrf.mxu0  ;;  %v3173_v15 = vsel %vm2650_vm1, %v2638_v46, 0.0  ;;  %v2530_v46 = vmax.f32 %v5281_v44, 0.0  ;;  %v2531_v25 = vmax.f32 %v5272_v37, 0.0 }
 0x1cd   :  { %v2522_v55 = vmax.f32 %v1755_v26, 0.0  ;;  %v2928_v51 = vsel %vm2650_vm1, %v2523_v62, 0.0  ;;  %v3174_v62 = vadd.f32 %v3173_v15, %v3172_v1  ;;  %v2532_v44 = vmax.f32 %v5303_v59, 0.0 }
 0x1ce   :  { %v2920_v35 = vadd.f32 %v2919_v31, %v2918_v22  ;;  %v4159_v4 = vpop.f32.mrf.mxu0  ;;  %v2345_v22 = vpop.f32.mrf.mxu1  ;;  %v2944_v15 = vsel %vm2650_vm1, %v2531_v25, 0.0 }
 0x1cf   :  { %v2927_v40 = vsel %vm2650_vm1, %v2522_v55, 0.0  ;;  %v2525_v32 = vmax.f32 %v4159_v4, 0.0  ;;  %v2640_v4 = vmax.f32 %v2345_v22, 0.0 }
 0x1d0   :  { %v2921_v21 = vrot.slane %v2920_v35, 4  ;;  %v1765_v42 = vpop.f32.mrf.mxu0  ;;  %v2929_v57 = vadd.f32 %v2928_v51, %v2927_v40  ;;  %v4336_v10 = vpop.f32.mrf.mxu1 }
 0x1d1   :  { %v2524_v53 = vmax.f32 %v1765_v42, 0.0  ;;  %v2932_v16 = vsel %vm2650_vm1, %v2525_v32, 0.0 }
 0x1d2   :  { %v2922_v56 = vadd.f32 %v2921_v21, %v2920_v35  ;;  %v4162_v38 = vpop.f32.mrf.mxu0  ;;  %v3175_v35 = vsel %vm2650_vm1, %v2639_v11, 0.0 }
 0x1d3   :  { %v2930_v61 = vsel %vm2650_vm1, %v2524_v53, 0.0  ;;  %v2527_v48 = vmax.f32 %v4162_v38, 0.0  ;;  %v3176_v30 = vadd.f32 %v3175_v35, %v3174_v62  ;;  %v2641_v53 = vmax.f32 %v4333_v54, 0.0  ;;  %v2355_v38 = vpop.f32.mrf.mxu1 }
 0x1d4   :  { %v2923_v6 = vrot.slane %v2922_v56, 2  ;;  %v2931_v7 = vadd.f32 %v2930_v61, %v2929_v57  ;;  %v1775_v8 = vpop.f32.mrf.mxu0  ;;  %v2940_v57 = vsel %vm2650_vm1, %v2529_v13, 0.0  ;;  %v2642_v54 = vmax.f32 %v2355_v38, 0.0 }
 0x1d5   :  { %v2526_v19 = vmax.f32 %v1775_v8, 0.0  ;;  %v2936_v40 = vsel %vm2650_vm1, %v2527_v48, 0.0  ;;  %v3179_v11 = vsel %vm2650_vm1, %v2641_v53, 0.0  ;;  %v4339_v48 = vpop.f32.mrf.mxu1  ;;  %v2539_v53 = vmax.f32 %v5364_v33, 0.0 }
 0x1d6   :  { %v2924_v26 = vadd.f32 %v2923_v6, %v2922_v56  ;;  %v2933_v28 = vadd.f32 %v2932_v16, %v2931_v7  ;;  %v3177_v56 = vsel %vm2650_vm1, %v2640_v4, 0.0  ;;  %v2942_v6 = vsel %vm2650_vm1, %v2530_v46, 0.0 }
 0x1d7   :  { %v2934_v31 = vsel %vm2650_vm1, %v2526_v19, 0.0  ;;  %v3178_v7 = vadd.f32 %v3177_v56, %v3176_v30  ;;  %v2533_v16 = vmax.f32 %v5294_v52, 0.0  ;;  %v2946_v19 = vsel %vm2650_vm1, %v2532_v44, 0.0  ;;  %v2365_v62 = vpop.f32.mrf.mxu1 }
 0x1d8   :  { %v2925_v55 = vrot.slane %v2924_v26, 1  ;;  %v2935_v36 = vadd.f32 %v2934_v31, %v2933_v28  ;;  %v2643_v28 = vmax.f32 %v4336_v10, 0.0  ;;  %v3181_v59 = vsel %vm2650_vm1, %v2642_v54, 0.0 }
 0x1d9   :  { %v3180_v22 = vadd.f32 %v3179_v11, %v3178_v7  ;;  %v2948_v0 = vsel %vm2650_vm1, %v2533_v16, 0.0  ;;  %v2535_v31 = vmax.f32 %v5316_v2, 0.0  ;;  %v2536_v52 = vmax.f32 %v5351_v24, 0.0 }
 0x1da   :  { %v2926_v21 = vadd.f32 %v2925_v55, %v2924_v26  ;;  %v2937_v42 = vadd.f32 %v2936_v40, %v2935_v36  ;;  %v3183_v13 = vsel %vm2650_vm1, %v2643_v28, 0.0  ;;  %v2537_v10 = vmax.f32 %v5341_v17, 0.0 }
 0x1db   :  { %v3182_v35 = vadd.f32 %v3181_v59, %v3180_v22  ;;  %v2952_v40 = vsel %vm2650_vm1, %v2535_v31, 0.0  ;;  %v2538_v2 = vmax.f32 %v5373_v41, 0.0  ;;  %v2540_v17 = vmax.f32 %v5395_v58, 0.0 }
 0x1dc   :  { %v3207_v51 = vmul.f32 0.00390625, %v2926_v21  ;;  %v2939_v32 = vadd.f32 %v2938_v45, %v2937_v42  ;;  %v4342_v21 = vpop.f32.mrf.mxu1  ;;  %v2954_v45 = vsel %vm2650_vm1, %v2536_v52, 0.0  ;;  %v2960_v44 = vsel %vm2650_vm1, %v2539_v53, 0.0 }
 0x1dd   :  { %v3184_v46 = vadd.f32 %v3183_v13, %v3182_v35  ;;  %v2958_v25 = vsel %vm2650_vm1, %v2538_v2, 0.0  ;;  %v2541_v7 = vmax.f32 %v5386_v50, 0.0  ;;  %v2962_v54 = vsel %vm2650_vm1, %v2540_v17, 0.0 }
 0x1de   :  { %v5793_v61 = vsel %vm3237_vm5, %v3207_v51, %v5738_v18  ;;  %v2941_v1 = vadd.f32 %v2940_v57, %v2939_v32  ;;  %v2534_v18 = vmax.f32 %v5325_v9, 0.0  ;;  %v2644_v9 = vmax.f32 %v2365_v62, 0.0  ;;  %v2375_v56 = vpop.f32.mrf.mxu1 }
 0x1df   :  { %v2645_v51 = vmax.f32 %v4339_v48, 0.0  ;;  %v2956_v32 = vsel %vm2650_vm1, %v2537_v10, 0.0  ;;  %v2646_v41 = vmax.f32 %v2375_v56, 0.0  ;;  %v2542_v33 = vmax.f32 %v5420_v12, 0.0 }
 0x1e0   :  { %v2943_v8 = vadd.f32 %v2942_v6, %v2941_v1  ;;  %v2950_v36 = vsel %vm2650_vm1, %v2534_v18, 0.0  ;;  %v3185_v24 = vsel %vm2650_vm1, %v2644_v9, 0.0  ;;  %v2647_v48 = vmax.f32 %v4342_v21, 0.0 }
 0x1e1   :  { %v3186_v38 = vadd.f32 %v3185_v24, %v3184_v46  ;;  %v3187_v6 = vsel %vm2650_vm1, %v2645_v51, 0.0  ;;  %v3189_v58 = vsel %vm2650_vm1, %v2646_v41, 0.0  ;;  %v2544_v50 = vmax.f32 %v5443_v29, 0.0 }
 0x1e2   :  { %v2945_v37 = vadd.f32 %v2944_v15, %v2943_v8  ;;  %v4345_v8 = vpop.f32.mrf.mxu1  ;;  %v2545_v62 = vmax.f32 %v5434_v20, 0.0  ;;  %v2547_v9 = vmax.f32 %v5456_v39, 0.0  ;;  %v2548_v21 = vmax.f32 %v5487_v5, 0.0 }
 0x1e3   :  { %v3188_v15 = vadd.f32 %v3187_v6, %v3186_v38  ;;  %v2549_v2 = vmax.f32 %v5478_v60, 0.0  ;;  %v2550_v51 = vmax.f32 %v5509_v23, 0.0  ;;  %v2551_v53 = vmax.f32 %v5500_v14, 0.0 }
 0x1e4   :  { %v2947_v26 = vadd.f32 %v2946_v19, %v2945_v37  ;;  %v2964_v37 = vsel %vm2650_vm1, %v2541_v7, 0.0  ;;  %v2543_v19 = vmax.f32 %v5408_v3, 0.0  ;;  %v2385_v18 = vpop.f32.mrf.mxu1  ;;  %v2546_v3 = vmax.f32 %v5465_v49, 0.0 }
 0x1e5   :  { %v3190_v28 = vadd.f32 %v3189_v58, %v3188_v15  ;;  %v2648_v12 = vmax.f32 %v2385_v18, 0.0  ;;  %v2972_v29 = vsel %vm2650_vm1, %v2545_v62, 0.0  ;;  %v2976_v49 = vsel %vm2650_vm1, %v2547_v9, 0.0  ;;  %v3331_v9 = vld [vmem:[%s5899_s3 + $0x18] sm:$0xff] }
 0x1e6   :  { %v2949_v55 = vadd.f32 %v2948_v0, %v2947_v26  ;;  %v2966_v26 = vsel %vm2650_vm1, %v2542_v33, 0.0  ;;  %v3191_v0 = vsel %vm2650_vm1, %v2647_v48, 0.0  ;;  %v2968_v31 = vsel %vm2650_vm1, %v2543_v19, 0.0 }
 0x1e7   :  { %v3192_v52 = vadd.f32 %v3191_v0, %v3190_v28  ;;  %v3193_v13 = vsel %vm2650_vm1, %v2648_v12, 0.0  ;;  %v2974_v10 = vsel %vm2650_vm1, %v2546_v3, 0.0  ;;  %v3059_v5 = vrot.slane %v5635_v27, 4 }
 0x1e8   :  { %v2951_v4 = vadd.f32 %v2950_v36, %v2949_v55  ;;  %v2970_v36 = vsel %vm2650_vm1, %v2544_v50, 0.0  ;;  %v3128_v56 = vrot.slane %v5717_v63, 4  ;;  %v2552_v60 = vmax.f32 %v5524_v43, 0.0 }
 0x1e9   :  { %v3194_v20 = vadd.f32 %v3193_v13, %v3192_v52  ;;  %v2553_v23 = vmax.f32 %v5519_v34, 0.0  ;;  %v3060_v6 = vadd.f32 %v3059_v5, %v5635_v27  ;;  %v3334_v13 = vld [vmem:[%s5899_s3 + $0x30] sm:$0xff] }
 0x1ea   :  { %v2953_v42 = vadd.f32 %v2952_v40, %v2951_v4  ;;  %v2649_v4 = vmax.f32 %v4345_v8, 0.0  ;;  %v3129_v41 = vadd.f32 %v3128_v56, %v5717_v63 }
 0x1ec   :  { %v2955_v30 = vadd.f32 %v2954_v45, %v2953_v42  ;;  %v3195_v45 = vsel %vm2650_vm1, %v2649_v4, 0.0  ;;  %v3130_v33 = vrot.slane %v3129_v41, 2 }
 0x1ed   :  { %v3196_v24 = vadd.f32 %v3195_v45, %v3194_v20  ;;  %v3221_v20 = vlaneseq }
 0x1ee   :  { %v2957_v57 = vadd.f32 %v2956_v32, %v2955_v30  ;;  %v2978_v30 = vsel %vm2650_vm1, %v2548_v21, 0.0  ;;  %v2980_v32 = vsel %vm2650_vm1, %v2549_v2, 0.0  ;;  %v3131_v58 = vadd.f32 %v3130_v33, %v3129_v41  ;;  %v3328_v21 = vld [vmem:[%s5899_s3] sm:$0xff] }
 0x1ef   :  { %v3197_v17 = vrot.slane %v3196_v24, 4  ;;  %v3222_v45 = vshrl.u32 %v3221_v20, 7 }
 0x1f0   :  { %v2959_v1 = vadd.f32 %v2958_v25, %v2957_v57  ;;  %v2982_v25 = vsel %vm2650_vm1, %v2550_v51, 0.0  ;;  %v3132_v18 = vrot.slane %v3131_v58, 1 }
 0x1f1   :  { %v3198_v7 = vadd.f32 %v3197_v17, %v3196_v24  ;;  %v3324_v2 = vsub.s32 1, %v3222_v45  ;;  %v3338_v56 = vsub.s32 2, %v3222_v45 }
 0x1f2   :  { %v2961_v11 = vadd.f32 %v2960_v44, %v2959_v1  ;;  %v2984_v1 = vsel %vm2650_vm1, %v2551_v53, 0.0  ;;  %v2986_v44 = vsel %vm2650_vm1, %v2552_v60, 0.0  ;;  %v3133_v28 = vadd.f32 %v3132_v18, %v3131_v58 }
 0x1f3   :  { %v3199_v15 = vrot.slane %v3198_v7, 2 }
 0x1f4   :  { %v2963_v16 = vadd.f32 %v2962_v54, %v2961_v11  ;;  %v2988_v11 = vsel %vm2650_vm1, %v2553_v23, 0.0  ;;  %v3061_v54 = vrot.slane %v3060_v6, 2  ;;  %v3210_v62 = vmul.f32 0.00390625, %v3133_v28 }
 0x1f5   :  { %v3200_v34 = vadd.f32 %v3199_v15, %v3198_v7 }
 0x1f6   :  { %v2965_v22 = vadd.f32 %v2964_v37, %v2963_v16  ;;  %v3062_v48 = vadd.f32 %v3061_v54, %v3060_v6 }
 0x1f8   :  { %v2967_v59 = vadd.f32 %v2966_v26, %v2965_v22  ;;  %v3063_v27 = vrot.slane %v3062_v48, 1  ;;  %v3201_v22 = vrot.slane %v3200_v34, 1 }
 0x1fa   :  { %v2969_v55 = vadd.f32 %v2968_v31, %v2967_v59  ;;  %v3064_v50 = vadd.f32 %v3063_v27, %v3062_v48  ;;  %v3202_v0 = vadd.f32 %v3201_v22, %v3200_v34 }
 0x1fc   :  { %v2971_v35 = vadd.f32 %v2970_v36, %v2969_v55  ;;  %v3209_v31 = vmul.f32 0.00390625, %v3064_v50  ;;  %v3211_v36 = vmul.f32 0.00390625, %v3202_v0 }
 0x1fe   :  { %v2973_v40 = vadd.f32 %v2972_v29, %v2971_v35  ;;  %v3335_v35 = vld [vmem:[%s5899_s3 + $0x38] sm:$0xff]  ;;  %v3332_v29 = vld [vmem:[%s5899_s3 + $0x20] sm:$0xff] }
 0x200   :  { %v2975_v42 = vadd.f32 %v2974_v10, %v2973_v40  ;;  %v3330_v40 = vld [vmem:[%s5899_s3 + $0x10] sm:$0xff]  ;;  %v3329_v10 = vld [vmem:[%s5899_s3 + $0x8] sm:$0xff] }
 0x202   :  { %v2977_v46 = vadd.f32 %v2976_v49, %v2975_v42  ;;  %v3212_v42 = vld [vmem:[%s5900_s4] sm:$0xff]  ;;  %v3223_v49 = vsub.s32 0, %v3222_v45 }
 0x203   :  { %vm3319_vm10 = vcmp.gt.f32.partialorder %v3212_v42, 0.5 }
 0x204   :  { %v2979_v39 = vadd.f32 %v2978_v30, %v2977_v46  ;;  %v4397_v46 = vmov 0   ;;  %v3224_v51 = vrot.slane %v3212_v42, %v3223_v49 }
 0x205   :  { %v3321_v30 = vsel %vm3319_vm10, 1, %v4397_v46 }
 0x206   :  { %v2981_v57 = vadd.f32 %v2980_v32, %v2979_v39  ;;  %v3325_v24 = vrot.slane %v3321_v30, %v3324_v2 }
 0x208   :  { %v2983_v38 = vadd.f32 %v2982_v25, %v2981_v57  ;;  %vm3326_vm11 = vcmp.eq.s32.totalorder %v3325_v24, 1  ;;  %v3339_v57 = vrot.slane %v3212_v42, %v3338_v56 }
 0x20a   :  { %v2985_v14 = vadd.f32 %v2984_v1, %v2983_v38 }
 0x20c   :  { %v2987_v8 = vadd.f32 %v2986_v44, %v2985_v14 }
 0x20e   :  { %v2989_v43 = vadd.f32 %v2988_v11, %v2987_v8 }
 0x210   :  { %v2990_v16 = vrot.slane %v2989_v43, 4 }
 0x212   :  { %v2991_v37 = vadd.f32 %v2990_v16, %v2989_v43 }
 0x214   :  { %v2992_v19 = vrot.slane %v2991_v37, 2 }
 0x216   :  { %v2993_v63 = vadd.f32 %v2992_v19, %v2991_v37 }
 0x218   :  { %v2994_v26 = vrot.slane %v2993_v63, 1 }
 0x21a   :  { %v2995_v59 = vadd.f32 %v2994_v26, %v2993_v63 }
 0x21c   :  { %v3208_v12 = vmul.f32 0.00390625, %v2995_v59 }
 0x21e   :  { %v3240_v55 = vsel %vm3239_vm6, %v3208_v12, %v5793_v61  ;;  %v3333_v61 = vld [vmem:[%s5899_s3 + $0x28] sm:$0xff] }
 0x21f   :  { %v3242_v3 = vsel %vm3241_vm7, %v3209_v31, %v3240_v55 }
 0x220   :  { %v3244_v52 = vsel %vm3243_vm8, %v3210_v62, %v3242_v3 }
 0x221   :  { %v3246_v4 = vsel %vm3245_vm9, %v3211_v36, %v3244_v52 }
 0x222   :  { %4363 = vmatmul.mubr.msk.f32.vlgmr.msra.gmra.mxu1 %vm2650_vm1, %v3246_v4 }
 0x223   :  { %4366 = vmatpush3.msra.mxu1 %v3335_v35  ;;  %4381 = vmatprep.mubr.msk.f32.mxu1 %vm4396_vm3, %v4395_v47 }
 0x224   :  { %4367 = vmatprep.subr.mxu1 %v4395_v47 }
 0x225   :  { %4368 = vmatpush3.msra.mxu1 %v3334_v13 }
 0x226   :  { %4369 = vmatprep.subr.mxu1 %v4395_v47 }
 0x227   :  { %4370 = vmatpush3.msra.mxu1 %v3333_v61 }
 0x228   :  { %4371 = vmatprep.subr.mxu1 %v4395_v47 }
 0x229   :  { %4372 = vmatpush3.msra.mxu1 %v3332_v29 }
 0x22a   :  { %4373 = vmatprep.subr.mxu1 %v4395_v47 }
 0x22b   :  { %4374 = vmatpush3.msra.mxu1 %v3331_v9 }
 0x22c   :  { %4375 = vmatprep.subr.mxu1 %v4395_v47 }
 0x22d   :  { %4376 = vmatpush3.msra.mxu1 %v3330_v40 }
 0x22e   :  { %4377 = vmatprep.subr.mxu1 %v4395_v47 }
 0x22f   :  { %4378 = vmatpush3.msra.mxu1 %v3329_v10 }
 0x230   :  { %4379 = vmatprep.subr.mxu1 %v4395_v47 }
 0x231   :  { %4380 = vmatpush3.msra.mxu1 %v3328_v21 }
 0x2e2   :  { %v3315_v39 = vpop.f32.mrf.mxu1 }
 0x2e3   :  { %v3316_v47 = vadd.f32 %v3315_v39, %v3224_v51 }
 0x2e4   :  { %v4364_v32 = vpop.f32.mrf.mxu1 }
 0x2e5   :  { %v3320_v53 = vmax.f32 %v3316_v47, 0.0 }
 0x2e7   :  { %v3327_v5 = vsel %vm3326_vm11, %v3320_v53, %v3316_v47 }
 0x2e8   :  { %4382 = vmatmul.mubr.msk.f32.vlgmr.msra.gmra.mxu1 %vm2650_vm1, %v3327_v5 }
 0x3a8   :  { %v3409_v25 = vpop.f32.mrf.mxu1 }
 0x3a9   :  { %v3410_v60 = vadd.f32 %v3409_v25, %v3339_v57 }
 0x3aa   :  { %v4383_v17 = vpop.f32.mrf.mxu1 }
 0x3ab   :  { %3413 = vst [vmem:[%s5901_s5] sm:$0xff] %v3410_v60 }

</bundles_post_ra>
